<compile_context>
chip_gen: v7x
topology: tpu7x:2x2x1
jax: 0.10.0
libtpu: 0.0.40
codegen_flags: <defaults>
</compile_context>

<pallas_src>
import functools

import numpy as np
import jax
import jax.numpy as jnp
from jax.experimental import pallas as pl
from jax.experimental.pallas import tpu as pltpu

EPS = 1e-5   # torch BatchNorm2d default eps
K = 4        # conv kernel size for every layer

# Row offsets of each weight block inside the packed bf16 weight slab [832, 64].
_W1_OFF = 0            # conv1 banded taps : 4 x [72, 64]
_W2_OFF = 288          # conv2 banded taps : 4 x [64, 64]
_W3_OFF = 544          # conv3 per-row blocks : 4 x [64, 32]
_WL_OFF = 800          # linear            : [32, 10]
_W_ROWS = 832
_W_COLS = 64


def _mxu_dot(a, b):
    """bf16 x bf16 -> f32 matmul (MXU friendly, f32 accumulation)."""
    return jnp.dot(a.astype(jnp.bfloat16), b.astype(jnp.bfloat16),
                   preferred_element_type=jnp.float32)


def _fold_lanes(v, groups, width):
    """[1, groups*width] -> [1, width]: sum the `groups` lane-chunks (channel minor)."""
    out = v[:, 0:width]
    for g in range(1, groups):
        out = out + v[:, g * width:(g + 1) * width]
    return out


def _tile_lanes(v, groups):
    """[1, width] -> [1, groups*width] by lane concatenation (no reshape relayout)."""
    if groups == 1:
        return v
    return jnp.concatenate([v] * groups, axis=1)


def _bn_relu(c, gamma, beta, *, groups, width, count):
    """Training-mode BatchNorm (biased batch variance) + ReLU, in f32.

    c: [R, groups*width] with lane layout (spatial-group, channel), channel minor.
    gamma/beta: [1, width].  count = #(n, spatial) samples per channel.
    """
    s = jnp.sum(c, axis=0, keepdims=True)
    mean_c = _fold_lanes(s, groups, width) * (1.0 / count)
    d = c - _tile_lanes(mean_c, groups)
    var_c = _fold_lanes(jnp.sum(d * d, axis=0, keepdims=True), groups, width) * (1.0 / count)
    scale_c = gamma * jax.lax.rsqrt(var_c + EPS)
    return jnp.maximum(d * _tile_lanes(scale_c, groups) + _tile_lanes(beta, groups), 0.0)


def _encoder_kernel(xs_ref, w_ref, p_ref, out_ref, a1_ref, *, n_batch):
    """Whole CNNEncoder forward in one kernel.

    xs_ref : [N*4*8, 72] bf16  conv1 input, rows grouped (n, kh, ho), lanes (padded col, cin)
    w_ref  : [832, 64]   bf16  packed banded weights (see _W*_OFF)
    p_ref  : [10, 64]    f32   packed biases / BN gammas / BN betas
    out_ref: [N, 10]     f32
    a1_ref : [N*10, 64]  f32   zero-padded conv1 activations, rows (n, padded row),
                               lanes (col, cin)
    """
    N = n_batch

    # ----------------- conv1: 4 banded tap-matmuls per image -> [N*8, 64] -----------------
    w1taps = [w_ref[_W1_OFF + kh * 72:_W1_OFF + (kh + 1) * 72, :] for kh in range(K)]
    c1_parts = []
    for n in range(N):
        acc = _mxu_dot(xs_ref[(n * K + 0) * 8:(n * K + 0) * 8 + 8, :], w1taps[0])
        for kh in range(1, K):
            r0 = (n * K + kh) * 8
            acc = acc + _mxu_dot(xs_ref[r0:r0 + 8, :], w1taps[kh])
        c1_parts.append(acc)
    c1 = jnp.concatenate(c1_parts, axis=0) + p_ref[0:1, 0:64]        # + conv1 bias (wo-tiled)
    y1 = _bn_relu(c1, p_ref[1:2, 0:8], p_ref[2:3, 0:8],
                  groups=8, width=8, count=float(N * 64))            # [N*8, 64] f32

    # ---- conv1 activations -> zero-padded slab: rows (n, padded row), lanes (col, cin) ----
    a1_ref[...] = jnp.zeros(a1_ref.shape, a1_ref.dtype)
    for n in range(N):
        a1_ref[n * 10 + 1:n * 10 + 9, :] = y1[n * 8:(n + 1) * 8, :]  # 1 block store / image

    # ----------------- conv2: 4 banded tap-matmuls per image -> [N*4, 64] -----------------
    w2taps = [w_ref[_W2_OFF + kh * 64:_W2_OFF + (kh + 1) * 64, :] for kh in range(K)]
    c2_parts = []
    for n in range(N):
        acc = _mxu_dot(a1_ref[pl.ds(n * 10 + 0, 4, stride=2), :], w2taps[0])
        for kh in range(1, K):
            rows = a1_ref[pl.ds(n * 10 + kh, 4, stride=2), :]        # [4, 64] strided bulk read
            acc = acc + _mxu_dot(rows, w2taps[kh])
        c2_parts.append(acc)
    c2 = jnp.concatenate(c2_parts, axis=0) + p_ref[3:4, 0:64]        # + conv2 bias (wo-tiled)
    y2 = _bn_relu(c2, p_ref[4:5, 0:16], p_ref[5:6, 0:16],
                  groups=4, width=16, count=float(N * 16))           # [N*4, 64] f32

    # ------- conv3 (k4 s1 p0 on 4x4 -> 1x1): per-feature-row weight blocks -> [N, 32] ------
    w3taps = [w_ref[_W3_OFF + h * 64:_W3_OFF + (h + 1) * 64, 0:32] for h in range(K)]
    c3_parts = []
    for n in range(N):
        acc = _mxu_dot(y2[n * 4:n * 4 + 1, :], w3taps[0])
        for h in range(1, K):
            acc = acc + _mxu_dot(y2[n * 4 + h:n * 4 + h + 1, :], w3taps[h])
        c3_parts.append(acc)
    c3 = jnp.concatenate(c3_parts, axis=0) + p_ref[6:7, 0:32]
    y3 = _bn_relu(c3, p_ref[7:8, 0:32], p_ref[8:9, 0:32],
                  groups=1, width=32, count=float(N))                # [N, 32] f32

    # ------------------- Reshape([inner_dim]) + Linear(32 -> 10) --------------------------
    od = out_ref.shape[1]
    out_ref[...] = _mxu_dot(y3, w_ref[_WL_OFF:_WL_OFF + 32, 0:od]) + p_ref[9:10, 0:od]


# ------------------------------ wrapper-side packing ---------------------------------------
def _banded_conv_weight(w, n_cols, n_wo, col_offset):
    """w: [Cout, Cin, K, K] -> [K, n_cols*Cin, n_wo*Cout] Toeplitz-banded tap matrices.

    Block (col, wo) holds w[:, :, kh, kw].T with kw = col + col_offset - 2*wo (zero outside
    the band), so a matmul against rows laid out as (col, cin) produces all wo at once.
    """
    cout, cin = w.shape[0], w.shape[1]
    kw = np.arange(n_cols)[:, None] + col_offset - 2 * np.arange(n_wo)[None, :]
    valid = ((kw >= 0) & (kw < K)).astype(np.float32)
    kwc = np.clip(kw, 0, K - 1)
    wt = jnp.transpose(w, (2, 3, 1, 0))                      # [kh, kw, cin, cout]
    g = wt[:, kwc, :, :]                                     # [kh, n_cols, n_wo, cin, cout]
    g = g * jnp.asarray(valid)[None, :, :, None, None]
    g = jnp.transpose(g, (0, 1, 3, 2, 4))                    # [kh, n_cols, cin, n_wo, cout]
    return g.reshape(K, n_cols * cin, n_wo * cout)


def _pack_weights(params):
    """All matmul weights -> one bf16 slab [832, 64] (static row offsets)."""
    w1b = _banded_conv_weight(params["w1"], 18, 8, 0).reshape(K * 72, 64)   # conv1
    w2b = _banded_conv_weight(params["w2"], 8, 4, 1).reshape(K * 64, 64)    # conv2
    w3b = jnp.transpose(params["w3"], (2, 3, 1, 0)).reshape(K * 64, 32)     # conv3 (h, w, cin)
    wl = params["wl"].T                                                     # [32, 10]
    slab = jnp.zeros((_W_ROWS, _W_COLS), jnp.float32)
    slab = slab.at[_W1_OFF:_W1_OFF + 288, :].set(w1b)
    slab = slab.at[_W2_OFF:_W2_OFF + 256, :].set(w2b)
    slab = slab.at[_W3_OFF:_W3_OFF + 256, 0:32].set(w3b)
    slab = slab.at[_WL_OFF:_WL_OFF + 32, 0:wl.shape[1]].set(wl)
    return slab.astype(jnp.bfloat16)


def _pack_params(params):
    """Biases / BN gammas / BN betas -> one f32 slab [10, 64]."""
    def row(v, width=64):
        v = v.reshape(-1).astype(jnp.float32)
        return jnp.pad(v, (0, width - v.shape[0]))
    return jnp.stack([
        row(jnp.tile(params["b1"], 8)),          # 0: conv1 bias tiled over wo (lanes=(wo,c))
        row(params["g1"]), row(params["be1"]),   # 1,2: BN1 gamma/beta [8]
        row(jnp.tile(params["b2"], 4)),          # 3: conv2 bias tiled over wo
        row(params["g2"]), row(params["be2"]),   # 4,5: BN2 gamma/beta [16]
        row(params["b3"]), row(params["g3"]), row(params["be3"]),   # 6,7,8: conv3 [32]
        row(params["bl"]),                       # 9: linear bias [10]
    ], axis=0)


def _pack_input(x):
    """[N,4,16,16] -> kh-deinterleaved padded-row slab [(n,kh,ho), (col,cin)] = [N*32, 72] bf16."""
    n = x.shape[0]
    xp = jnp.pad(x, ((0, 0), (0, 0), (1, 1), (1, 1)))            # [N, 4, 18, 18]
    xr = jnp.transpose(xp, (0, 2, 3, 1)).reshape(n, 18, 18 * 4)  # rows=(padded row), lanes=(col,cin)
    taps = [xr[:, kh:kh + 16:2, :] for kh in range(K)]           # rows 2*ho+kh, ho=0..7
    xs = jnp.stack(taps, axis=1).reshape(n * K * 8, 72)
    return xs.astype(jnp.bfloat16)


def cnn_encoder_forward(x, params):
    """x: [N, 4, 16, 16] f32 (NCHW, like PyTorch); params: torch-layout parameter dict."""
    N = x.shape[0]
    assert x.shape[1:] == (4, 16, 16), "small-example config: input_dim=4, 16x16 images"
    out_dim = params["wl"].shape[0]

    xs = _pack_input(x)          # [N*32, 72] bf16
    wslab = _pack_weights(params)  # [832, 64] bf16
    pslab = _pack_params(params)   # [10, 64]  f32

    vmem = pl.BlockSpec(memory_space=pltpu.MemorySpace.VMEM)
    return pl.pallas_call(
        functools.partial(_encoder_kernel, n_batch=N),
        out_shape=jax.ShapeDtypeStruct((N, out_dim), jnp.float32),
        in_specs=[vmem, vmem, vmem],
        out_specs=vmem,
        scratch_shapes=[
            pltpu.VMEM((N * 10, 64), jnp.float32),   # zero-padded conv1 activation slab
        ],
    )(xs, wslab, pslab)


# ------------------------------- pure-JAX reference ----------------------------------------
def _ref_forward(x, params):
    """Independent im2col-based reference with the same precision policy (bf16 MXU, f32 BN)."""
    def im2col(h_nchw, k, stride, pad):
        n, c, hh, ww = h_nchw.shape
        hp = jnp.transpose(jnp.pad(h_nchw, ((0, 0), (0, 0), (pad, pad), (pad, pad))),
                           (0, 2, 3, 1))                 # N, Hp, Wp, C
        ho = (hh + 2 * pad - k) // stride + 1
        wo = (ww + 2 * pad - k) // stride + 1
        cols = []
        for kh in range(k):
            for kw in range(k):
                cols.append(hp[:, kh:kh + stride * ho:stride, kw:kw + stride * wo:stride, :])
        pat = jnp.concatenate(cols, axis=-1)             # (kh, kw, cin) order, cin minor
        return pat.reshape(n * ho * wo, k * k * c), ho, wo

    def cflat(w):
        return jnp.transpose(w, (2, 3, 1, 0)).reshape(-1, w.shape[0])

    h = x
    for (wk, bk, gk, bek, stride, pad) in (
        (params["w1"], params["b1"], params["g1"], params["be1"], 2, 1),
        (params["w2"], params["b2"], params["g2"], params["be2"], 2, 1),
        (params["w3"], params["b3"], params["g3"], params["be3"], 1, 0),
    ):
        n = h.shape[0]
        pat, ho, wo = im2col(h, K, stride, pad)
        c = _mxu_dot(pat, cflat(wk)) + bk.reshape(1, -1)
        mean = jnp.mean(c, axis=0, keepdims=True)
        var = jnp.mean((c - mean) ** 2, axis=0, keepdims=True)
        y = jnp.maximum((c - mean) * jax.lax.rsqrt(var + EPS) * gk.reshape(1, -1)
                        + bek.reshape(1, -1), 0.0)
        h = jnp.transpose(y.reshape(n, ho, wo, -1), (0, 3, 1, 2))
    feat = h.reshape(h.shape[0], -1)                      # ReshapeBlock([inner_dim])
    return _mxu_dot(feat, params["wl"].T) + params["bl"].reshape(1, -1)


if __name__ == "__main__":
    key = jax.random.PRNGKey(0)
    ks = jax.random.split(key, 16)
    N = 2
    x = jax.random.normal(ks[0], (N, 4, 16, 16), jnp.float32)

    def rnd(k, shape, scale=0.1):
        return scale * jax.random.normal(k, shape, jnp.float32)

    params = dict(
        w1=rnd(ks[1], (8, 4, 4, 4)),    b1=rnd(ks[2], (8,)),
        g1=1.0 + rnd(ks[3], (8,)),      be1=rnd(ks[4], (8,)),
        w2=rnd(ks[5], (16, 8, 4, 4)),   b2=rnd(ks[6], (16,)),
        g2=1.0 + rnd(ks[7], (16,)),     be2=rnd(ks[8], (16,)),
        w3=rnd(ks[9], (32, 16, 4, 4)),  b3=rnd(ks[10], (32,)),
        g3=1.0 + rnd(ks[11], (32,)),    be3=rnd(ks[12], (32,)),
        wl=rnd(ks[13], (10, 32)),       bl=rnd(ks[14], (10,)),
    )

    out = jax.block_until_ready(jax.jit(cnn_encoder_forward)(x, params))
    ref = jax.block_until_ready(_ref_forward(x, params))

    if out.shape == (N, 10) and bool(jnp.allclose(out, ref, rtol=1e-2, atol=1e-2)):
        print("KERNEL_OK")
    else:
        print("MISMATCH max_abs_err=", float(jnp.max(jnp.abs(out - ref))))
</pallas_src>

<mosaic_0001>
module attributes {stable_mosaic.version = 11 : i64} {
  func.func @_encoder_kernel(%arg0: memref<64x72xbf16, #tpu.memory_space<vmem>>, %arg1: memref<832x64xbf16, #tpu.memory_space<vmem>>, %arg2: memref<10x64xf32, #tpu.memory_space<vmem>>, %arg3: memref<2x10xf32, #tpu.memory_space<vmem>>, %arg4: memref<20x64xf32, #tpu.memory_space<vmem>>) attributes {dimension_semantics = [], scalar_prefetch = 0 : i64, scratch_operands = 1 : i64, tpu.core_type = #tpu.core_type<tc>} {
    %c0 = arith.constant 0 : index
    %c0_0 = arith.constant 0 : index
    %0 = vector.load %arg1[%c0, %c0_0] : memref<832x64xbf16, #tpu.memory_space<vmem>>, vector<72x64xbf16>
    %c72 = arith.constant 72 : index
    %c0_1 = arith.constant 0 : index
    %1 = vector.load %arg1[%c72, %c0_1] : memref<832x64xbf16, #tpu.memory_space<vmem>>, vector<72x64xbf16>
    %c144 = arith.constant 144 : index
    %c0_2 = arith.constant 0 : index
    %2 = vector.load %arg1[%c144, %c0_2] : memref<832x64xbf16, #tpu.memory_space<vmem>>, vector<72x64xbf16>
    %c216 = arith.constant 216 : index
    %c0_3 = arith.constant 0 : index
    %3 = vector.load %arg1[%c216, %c0_3] : memref<832x64xbf16, #tpu.memory_space<vmem>>, vector<72x64xbf16>
    %c0_4 = arith.constant 0 : index
    %c0_5 = arith.constant 0 : index
    %4 = vector.load %arg0[%c0_4, %c0_5] : memref<64x72xbf16, #tpu.memory_space<vmem>>, vector<8x72xbf16>
    %cst = arith.constant dense<0.000000e+00> : vector<8x64xf32>
    %5 = tpu.matmul %4, %0, %cst {dimension_numbers = #tpu.dot_dimension_numbers<[1], [0], [0], [1], [0, 0, 1, 1], [], []>} : vector<8x72xbf16>, vector<72x64xbf16>, vector<8x64xf32> -> vector<8x64xf32>
    %c8 = arith.constant 8 : index
    %c0_6 = arith.constant 0 : index
    %6 = vector.load %arg0[%c8, %c0_6] : memref<64x72xbf16, #tpu.memory_space<vmem>>, vector<8x72xbf16>
    %cst_7 = arith.constant dense<0.000000e+00> : vector<8x64xf32>
    %7 = tpu.matmul %6, %1, %cst_7 {dimension_numbers = #tpu.dot_dimension_numbers<[1], [0], [0], [1], [0, 0, 1, 1], [], []>} : vector<8x72xbf16>, vector<72x64xbf16>, vector<8x64xf32> -> vector<8x64xf32>
    %8 = arith.addf %5, %7 : vector<8x64xf32>
    %c16 = arith.constant 16 : index
    %c0_8 = arith.constant 0 : index
    %9 = vector.load %arg0[%c16, %c0_8] : memref<64x72xbf16, #tpu.memory_space<vmem>>, vector<8x72xbf16>
    %cst_9 = arith.constant dense<0.000000e+00> : vector<8x64xf32>
    %10 = tpu.matmul %9, %2, %cst_9 {dimension_numbers = #tpu.dot_dimension_numbers<[1], [0], [0], [1], [0, 0, 1, 1], [], []>} : vector<8x72xbf16>, vector<72x64xbf16>, vector<8x64xf32> -> vector<8x64xf32>
    %11 = arith.addf %8, %10 : vector<8x64xf32>
    %c24 = arith.constant 24 : index
    %c0_10 = arith.constant 0 : index
    %12 = vector.load %arg0[%c24, %c0_10] : memref<64x72xbf16, #tpu.memory_space<vmem>>, vector<8x72xbf16>
    %cst_11 = arith.constant dense<0.000000e+00> : vector<8x64xf32>
    %13 = tpu.matmul %12, %3, %cst_11 {dimension_numbers = #tpu.dot_dimension_numbers<[1], [0], [0], [1], [0, 0, 1, 1], [], []>} : vector<8x72xbf16>, vector<72x64xbf16>, vector<8x64xf32> -> vector<8x64xf32>
    %14 = arith.addf %11, %13 : vector<8x64xf32>
    %c32 = arith.constant 32 : index
    %c0_12 = arith.constant 0 : index
    %15 = vector.load %arg0[%c32, %c0_12] : memref<64x72xbf16, #tpu.memory_space<vmem>>, vector<8x72xbf16>
    %cst_13 = arith.constant dense<0.000000e+00> : vector<8x64xf32>
    %16 = tpu.matmul %15, %0, %cst_13 {dimension_numbers = #tpu.dot_dimension_numbers<[1], [0], [0], [1], [0, 0, 1, 1], [], []>} : vector<8x72xbf16>, vector<72x64xbf16>, vector<8x64xf32> -> vector<8x64xf32>
    %c40 = arith.constant 40 : index
    %c0_14 = arith.constant 0 : index
    %17 = vector.load %arg0[%c40, %c0_14] : memref<64x72xbf16, #tpu.memory_space<vmem>>, vector<8x72xbf16>
    %cst_15 = arith.constant dense<0.000000e+00> : vector<8x64xf32>
    %18 = tpu.matmul %17, %1, %cst_15 {dimension_numbers = #tpu.dot_dimension_numbers<[1], [0], [0], [1], [0, 0, 1, 1], [], []>} : vector<8x72xbf16>, vector<72x64xbf16>, vector<8x64xf32> -> vector<8x64xf32>
    %19 = arith.addf %16, %18 : vector<8x64xf32>
    %c48 = arith.constant 48 : index
    %c0_16 = arith.constant 0 : index
    %20 = vector.load %arg0[%c48, %c0_16] : memref<64x72xbf16, #tpu.memory_space<vmem>>, vector<8x72xbf16>
    %cst_17 = arith.constant dense<0.000000e+00> : vector<8x64xf32>
    %21 = tpu.matmul %20, %2, %cst_17 {dimension_numbers = #tpu.dot_dimension_numbers<[1], [0], [0], [1], [0, 0, 1, 1], [], []>} : vector<8x72xbf16>, vector<72x64xbf16>, vector<8x64xf32> -> vector<8x64xf32>
    %22 = arith.addf %19, %21 : vector<8x64xf32>
    %c56 = arith.constant 56 : index
    %c0_18 = arith.constant 0 : index
    %23 = vector.load %arg0[%c56, %c0_18] : memref<64x72xbf16, #tpu.memory_space<vmem>>, vector<8x72xbf16>
    %cst_19 = arith.constant dense<0.000000e+00> : vector<8x64xf32>
    %24 = tpu.matmul %23, %3, %cst_19 {dimension_numbers = #tpu.dot_dimension_numbers<[1], [0], [0], [1], [0, 0, 1, 1], [], []>} : vector<8x72xbf16>, vector<72x64xbf16>, vector<8x64xf32> -> vector<8x64xf32>
    %25 = arith.addf %22, %24 : vector<8x64xf32>
    %26 = tpu.concatenate %14, %25 in 0 : vector<8x64xf32>, vector<8x64xf32> -> vector<16x64xf32>
    %c0_20 = arith.constant 0 : index
    %c0_21 = arith.constant 0 : index
    %27 = vector.load %arg2[%c0_20, %c0_21] : memref<10x64xf32, #tpu.memory_space<vmem>>, vector<1x64xf32>
    %28 = vector.broadcast %27 : vector<1x64xf32> to vector<16x64xf32>
    %29 = arith.addf %26, %28 : vector<16x64xf32>
    %c1 = arith.constant 1 : index
    %c0_22 = arith.constant 0 : index
    %30 = vector.load %arg2[%c1, %c0_22] : memref<10x64xf32, #tpu.memory_space<vmem>>, vector<1x8xf32>
    %c2 = arith.constant 2 : index
    %c0_23 = arith.constant 0 : index
    %31 = vector.load %arg2[%c2, %c0_23] : memref<10x64xf32, #tpu.memory_space<vmem>>, vector<1x8xf32>
    %cst_24 = arith.constant dense<0.000000e+00> : vector<64xf32>
    %32 = vector.multi_reduction <add>, %29, %cst_24 [0] : vector<16x64xf32> to vector<64xf32>
    %33 = vector.shape_cast %32 : vector<64xf32> to vector<1x64xf32>
    %34 = vector.extract_strided_slice %33 {offsets = [0, 0], sizes = [1, 8], strides = [1, 1]} : vector<1x64xf32> to vector<1x8xf32>
    %35 = vector.extract_strided_slice %33 {offsets = [0, 8], sizes = [1, 8], strides = [1, 1]} : vector<1x64xf32> to vector<1x8xf32>
    %36 = arith.addf %34, %35 : vector<1x8xf32>
    %37 = vector.extract_strided_slice %33 {offsets = [0, 16], sizes = [1, 8], strides = [1, 1]} : vector<1x64xf32> to vector<1x8xf32>
    %38 = arith.addf %36, %37 : vector<1x8xf32>
    %39 = vector.extract_strided_slice %33 {offsets = [0, 24], sizes = [1, 8], strides = [1, 1]} : vector<1x64xf32> to vector<1x8xf32>
    %40 = arith.addf %38, %39 : vector<1x8xf32>
    %41 = vector.extract_strided_slice %33 {offsets = [0, 32], sizes = [1, 8], strides = [1, 1]} : vector<1x64xf32> to vector<1x8xf32>
    %42 = arith.addf %40, %41 : vector<1x8xf32>
    %43 = vector.extract_strided_slice %33 {offsets = [0, 40], sizes = [1, 8], strides = [1, 1]} : vector<1x64xf32> to vector<1x8xf32>
    %44 = arith.addf %42, %43 : vector<1x8xf32>
    %45 = vector.extract_strided_slice %33 {offsets = [0, 48], sizes = [1, 8], strides = [1, 1]} : vector<1x64xf32> to vector<1x8xf32>
    %46 = arith.addf %44, %45 : vector<1x8xf32>
    %47 = vector.extract_strided_slice %33 {offsets = [0, 56], sizes = [1, 8], strides = [1, 1]} : vector<1x64xf32> to vector<1x8xf32>
    %48 = arith.addf %46, %47 : vector<1x8xf32>
    %cst_25 = arith.constant 7.812500e-03 : f32
    %49 = vector.broadcast %cst_25 : f32 to vector<1x8xf32>
    %50 = arith.mulf %48, %49 : vector<1x8xf32>
    %51 = tpu.concatenate %50, %50, %50, %50, %50, %50, %50, %50 in 1 : vector<1x8xf32>, vector<1x8xf32>, vector<1x8xf32>, vector<1x8xf32>, vector<1x8xf32>, vector<1x8xf32>, vector<1x8xf32>, vector<1x8xf32> -> vector<1x64xf32>
    %52 = vector.broadcast %51 : vector<1x64xf32> to vector<16x64xf32>
    %53 = arith.subf %29, %52 : vector<16x64xf32>
    %54 = arith.mulf %53, %53 : vector<16x64xf32>
    %cst_26 = arith.constant dense<0.000000e+00> : vector<64xf32>
    %55 = vector.multi_reduction <add>, %54, %cst_26 [0] : vector<16x64xf32> to vector<64xf32>
    %56 = vector.shape_cast %55 : vector<64xf32> to vector<1x64xf32>
    %57 = vector.extract_strided_slice %56 {offsets = [0, 0], sizes = [1, 8], strides = [1, 1]} : vector<1x64xf32> to vector<1x8xf32>
    %58 = vector.extract_strided_slice %56 {offsets = [0, 8], sizes = [1, 8], strides = [1, 1]} : vector<1x64xf32> to vector<1x8xf32>
    %59 = arith.addf %57, %58 : vector<1x8xf32>
    %60 = vector.extract_strided_slice %56 {offsets = [0, 16], sizes = [1, 8], strides = [1, 1]} : vector<1x64xf32> to vector<1x8xf32>
    %61 = arith.addf %59, %60 : vector<1x8xf32>
    %62 = vector.extract_strided_slice %56 {offsets = [0, 24], sizes = [1, 8], strides = [1, 1]} : vector<1x64xf32> to vector<1x8xf32>
    %63 = arith.addf %61, %62 : vector<1x8xf32>
    %64 = vector.extract_strided_slice %56 {offsets = [0, 32], sizes = [1, 8], strides = [1, 1]} : vector<1x64xf32> to vector<1x8xf32>
    %65 = arith.addf %63, %64 : vector<1x8xf32>
    %66 = vector.extract_strided_slice %56 {offsets = [0, 40], sizes = [1, 8], strides = [1, 1]} : vector<1x64xf32> to vector<1x8xf32>
    %67 = arith.addf %65, %66 : vector<1x8xf32>
    %68 = vector.extract_strided_slice %56 {offsets = [0, 48], sizes = [1, 8], strides = [1, 1]} : vector<1x64xf32> to vector<1x8xf32>
    %69 = arith.addf %67, %68 : vector<1x8xf32>
    %70 = vector.extract_strided_slice %56 {offsets = [0, 56], sizes = [1, 8], strides = [1, 1]} : vector<1x64xf32> to vector<1x8xf32>
    %71 = arith.addf %69, %70 : vector<1x8xf32>
    %cst_27 = arith.constant 7.812500e-03 : f32
    %72 = vector.broadcast %cst_27 : f32 to vector<1x8xf32>
    %73 = arith.mulf %71, %72 : vector<1x8xf32>
    %cst_28 = arith.constant 9.99999974E-6 : f32
    %74 = vector.broadcast %cst_28 : f32 to vector<1x8xf32>
    %75 = arith.addf %73, %74 : vector<1x8xf32>
    %76 = math.rsqrt %75 : vector<1x8xf32>
    %77 = arith.mulf %30, %76 : vector<1x8xf32>
    %78 = tpu.concatenate %77, %77, %77, %77, %77, %77, %77, %77 in 1 : vector<1x8xf32>, vector<1x8xf32>, vector<1x8xf32>, vector<1x8xf32>, vector<1x8xf32>, vector<1x8xf32>, vector<1x8xf32>, vector<1x8xf32> -> vector<1x64xf32>
    %79 = vector.broadcast %78 : vector<1x64xf32> to vector<16x64xf32>
    %80 = arith.mulf %53, %79 : vector<16x64xf32>
    %81 = tpu.concatenate %31, %31, %31, %31, %31, %31, %31, %31 in 1 : vector<1x8xf32>, vector<1x8xf32>, vector<1x8xf32>, vector<1x8xf32>, vector<1x8xf32>, vector<1x8xf32>, vector<1x8xf32>, vector<1x8xf32> -> vector<1x64xf32>
    %82 = vector.broadcast %81 : vector<1x64xf32> to vector<16x64xf32>
    %83 = arith.addf %80, %82 : vector<16x64xf32>
    %cst_29 = arith.constant 0.000000e+00 : f32
    %84 = vector.broadcast %cst_29 : f32 to vector<16x64xf32>
    %85 = arith.maximumf %83, %84 : vector<16x64xf32>
    %cst_30 = arith.constant 0.000000e+00 : f32
    %86 = vector.broadcast %cst_30 : f32 to vector<20x64xf32>
    %c0_31 = arith.constant 0 : index
    %c0_32 = arith.constant 0 : index
    %87 = vector.load %arg4[%c0_31, %c0_32] : memref<20x64xf32, #tpu.memory_space<vmem>>, vector<20x64xf32>
    tpu.vector_store %arg4[%c0_31, %c0_32], %86 {strides = array<i32>} : memref<20x64xf32, #tpu.memory_space<vmem>>, vector<20x64xf32>,
    %88 = vector.extract_strided_slice %85 {offsets = [0, 0], sizes = [8, 64], strides = [1, 1]} : vector<16x64xf32> to vector<8x64xf32>
    %c1_33 = arith.constant 1 : index
    %c0_34 = arith.constant 0 : index
    %89 = vector.load %arg4[%c1_33, %c0_34] : memref<20x64xf32, #tpu.memory_space<vmem>>, vector<8x64xf32>
    tpu.vector_store %arg4[%c1_33, %c0_34], %88 {strides = array<i32>} : memref<20x64xf32, #tpu.memory_space<vmem>>, vector<8x64xf32>,
    %90 = vector.extract_strided_slice %85 {offsets = [8, 0], sizes = [8, 64], strides = [1, 1]} : vector<16x64xf32> to vector<8x64xf32>
    %c11 = arith.constant 11 : index
    %c0_35 = arith.constant 0 : index
    %91 = vector.load %arg4[%c11, %c0_35] : memref<20x64xf32, #tpu.memory_space<vmem>>, vector<8x64xf32>
    tpu.vector_store %arg4[%c11, %c0_35], %90 {strides = array<i32>} : memref<20x64xf32, #tpu.memory_space<vmem>>, vector<8x64xf32>,
    %c288 = arith.constant 288 : index
    %c0_36 = arith.constant 0 : index
    %92 = vector.load %arg1[%c288, %c0_36] : memref<832x64xbf16, #tpu.memory_space<vmem>>, vector<64x64xbf16>
    %c352 = arith.constant 352 : index
    %c0_37 = arith.constant 0 : index
    %93 = vector.load %arg1[%c352, %c0_37] : memref<832x64xbf16, #tpu.memory_space<vmem>>, vector<64x64xbf16>
    %c416 = arith.constant 416 : index
    %c0_38 = arith.constant 0 : index
    %94 = vector.load %arg1[%c416, %c0_38] : memref<832x64xbf16, #tpu.memory_space<vmem>>, vector<64x64xbf16>
    %c480 = arith.constant 480 : index
    %c0_39 = arith.constant 0 : index
    %95 = vector.load %arg1[%c480, %c0_39] : memref<832x64xbf16, #tpu.memory_space<vmem>>, vector<64x64xbf16>
    %c0_40 = arith.constant 0 : index
    %c0_41 = arith.constant 0 : index
    %96 = tpu.strided_load %arg4[%c0_40, %c0_41] {strides = array<i32: 2, 1>} : memref<20x64xf32, #tpu.memory_space<vmem>>, vector<4x64xf32>
    %97 = arith.truncf %96 : vector<4x64xf32> to vector<4x64xbf16>
    %cst_42 = arith.constant dense<0.000000e+00> : vector<4x64xf32>
    %98 = tpu.matmul %97, %92, %cst_42 {dimension_numbers = #tpu.dot_dimension_numbers<[1], [0], [0], [1], [0, 0, 1, 1], [], []>} : vector<4x64xbf16>, vector<64x64xbf16>, vector<4x64xf32> -> vector<4x64xf32>
    %c1_43 = arith.constant 1 : index
    %c0_44 = arith.constant 0 : index
    %99 = tpu.strided_load %arg4[%c1_43, %c0_44] {strides = array<i32: 2, 1>} : memref<20x64xf32, #tpu.memory_space<vmem>>, vector<4x64xf32>
    %100 = arith.truncf %99 : vector<4x64xf32> to vector<4x64xbf16>
    %cst_45 = arith.constant dense<0.000000e+00> : vector<4x64xf32>
    %101 = tpu.matmul %100, %93, %cst_45 {dimension_numbers = #tpu.dot_dimension_numbers<[1], [0], [0], [1], [0, 0, 1, 1], [], []>} : vector<4x64xbf16>, vector<64x64xbf16>, vector<4x64xf32> -> vector<4x64xf32>
    %102 = arith.addf %98, %101 : vector<4x64xf32>
    %c2_46 = arith.constant 2 : index
    %c0_47 = arith.constant 0 : index
    %103 = tpu.strided_load %arg4[%c2_46, %c0_47] {strides = array<i32: 2, 1>} : memref<20x64xf32, #tpu.memory_space<vmem>>, vector<4x64xf32>
    %104 = arith.truncf %103 : vector<4x64xf32> to vector<4x64xbf16>
    %cst_48 = arith.constant dense<0.000000e+00> : vector<4x64xf32>
    %105 = tpu.matmul %104, %94, %cst_48 {dimension_numbers = #tpu.dot_dimension_numbers<[1], [0], [0], [1], [0, 0, 1, 1], [], []>} : vector<4x64xbf16>, vector<64x64xbf16>, vector<4x64xf32> -> vector<4x64xf32>
    %106 = arith.addf %102, %105 : vector<4x64xf32>
    %c3 = arith.constant 3 : index
    %c0_49 = arith.constant 0 : index
    %107 = tpu.strided_load %arg4[%c3, %c0_49] {strides = array<i32: 2, 1>} : memref<20x64xf32, #tpu.memory_space<vmem>>, vector<4x64xf32>
    %108 = arith.truncf %107 : vector<4x64xf32> to vector<4x64xbf16>
    %cst_50 = arith.constant dense<0.000000e+00> : vector<4x64xf32>
    %109 = tpu.matmul %108, %95, %cst_50 {dimension_numbers = #tpu.dot_dimension_numbers<[1], [0], [0], [1], [0, 0, 1, 1], [], []>} : vector<4x64xbf16>, vector<64x64xbf16>, vector<4x64xf32> -> vector<4x64xf32>
    %110 = arith.addf %106, %109 : vector<4x64xf32>
    %c10 = arith.constant 10 : index
    %c0_51 = arith.constant 0 : index
    %111 = tpu.strided_load %arg4[%c10, %c0_51] {strides = array<i32: 2, 1>} : memref<20x64xf32, #tpu.memory_space<vmem>>, vector<4x64xf32>
    %112 = arith.truncf %111 : vector<4x64xf32> to vector<4x64xbf16>
    %cst_52 = arith.constant dense<0.000000e+00> : vector<4x64xf32>
    %113 = tpu.matmul %112, %92, %cst_52 {dimension_numbers = #tpu.dot_dimension_numbers<[1], [0], [0], [1], [0, 0, 1, 1], [], []>} : vector<4x64xbf16>, vector<64x64xbf16>, vector<4x64xf32> -> vector<4x64xf32>
    %c11_53 = arith.constant 11 : index
    %c0_54 = arith.constant 0 : index
    %114 = tpu.strided_load %arg4[%c11_53, %c0_54] {strides = array<i32: 2, 1>} : memref<20x64xf32, #tpu.memory_space<vmem>>, vector<4x64xf32>
    %115 = arith.truncf %114 : vector<4x64xf32> to vector<4x64xbf16>
    %cst_55 = arith.constant dense<0.000000e+00> : vector<4x64xf32>
    %116 = tpu.matmul %115, %93, %cst_55 {dimension_numbers = #tpu.dot_dimension_numbers<[1], [0], [0], [1], [0, 0, 1, 1], [], []>} : vector<4x64xbf16>, vector<64x64xbf16>, vector<4x64xf32> -> vector<4x64xf32>
    %117 = arith.addf %113, %116 : vector<4x64xf32>
    %c12 = arith.constant 12 : index
    %c0_56 = arith.constant 0 : index
    %118 = tpu.strided_load %arg4[%c12, %c0_56] {strides = array<i32: 2, 1>} : memref<20x64xf32, #tpu.memory_space<vmem>>, vector<4x64xf32>
    %119 = arith.truncf %118 : vector<4x64xf32> to vector<4x64xbf16>
    %cst_57 = arith.constant dense<0.000000e+00> : vector<4x64xf32>
    %120 = tpu.matmul %119, %94, %cst_57 {dimension_numbers = #tpu.dot_dimension_numbers<[1], [0], [0], [1], [0, 0, 1, 1], [], []>} : vector<4x64xbf16>, vector<64x64xbf16>, vector<4x64xf32> -> vector<4x64xf32>
    %121 = arith.addf %117, %120 : vector<4x64xf32>
    %c13 = arith.constant 13 : index
    %c0_58 = arith.constant 0 : index
    %122 = tpu.strided_load %arg4[%c13, %c0_58] {strides = array<i32: 2, 1>} : memref<20x64xf32, #tpu.memory_space<vmem>>, vector<4x64xf32>
    %123 = arith.truncf %122 : vector<4x64xf32> to vector<4x64xbf16>
    %cst_59 = arith.constant dense<0.000000e+00> : vector<4x64xf32>
    %124 = tpu.matmul %123, %95, %cst_59 {dimension_numbers = #tpu.dot_dimension_numbers<[1], [0], [0], [1], [0, 0, 1, 1], [], []>} : vector<4x64xbf16>, vector<64x64xbf16>, vector<4x64xf32> -> vector<4x64xf32>
    %125 = arith.addf %121, %124 : vector<4x64xf32>
    %126 = tpu.concatenate %110, %125 in 0 : vector<4x64xf32>, vector<4x64xf32> -> vector<8x64xf32>
    %c3_60 = arith.constant 3 : index
    %c0_61 = arith.constant 0 : index
    %127 = vector.load %arg2[%c3_60, %c0_61] : memref<10x64xf32, #tpu.memory_space<vmem>>, vector<1x64xf32>
    %128 = vector.broadcast %127 : vector<1x64xf32> to vector<8x64xf32>
    %129 = arith.addf %126, %128 : vector<8x64xf32>
    %c4 = arith.constant 4 : index
    %c0_62 = arith.constant 0 : index
    %130 = vector.load %arg2[%c4, %c0_62] : memref<10x64xf32, #tpu.memory_space<vmem>>, vector<1x16xf32>
    %c5 = arith.constant 5 : index
    %c0_63 = arith.constant 0 : index
    %131 = vector.load %arg2[%c5, %c0_63] : memref<10x64xf32, #tpu.memory_space<vmem>>, vector<1x16xf32>
    %cst_64 = arith.constant dense<0.000000e+00> : vector<64xf32>
    %132 = vector.multi_reduction <add>, %129, %cst_64 [0] : vector<8x64xf32> to vector<64xf32>
    %133 = vector.shape_cast %132 : vector<64xf32> to vector<1x64xf32>
    %134 = vector.extract_strided_slice %133 {offsets = [0, 0], sizes = [1, 16], strides = [1, 1]} : vector<1x64xf32> to vector<1x16xf32>
    %135 = vector.extract_strided_slice %133 {offsets = [0, 16], sizes = [1, 16], strides = [1, 1]} : vector<1x64xf32> to vector<1x16xf32>
    %136 = arith.addf %134, %135 : vector<1x16xf32>
    %137 = vector.extract_strided_slice %133 {offsets = [0, 32], sizes = [1, 16], strides = [1, 1]} : vector<1x64xf32> to vector<1x16xf32>
    %138 = arith.addf %136, %137 : vector<1x16xf32>
    %139 = vector.extract_strided_slice %133 {offsets = [0, 48], sizes = [1, 16], strides = [1, 1]} : vector<1x64xf32> to vector<1x16xf32>
    %140 = arith.addf %138, %139 : vector<1x16xf32>
    %cst_65 = arith.constant 3.125000e-02 : f32
    %141 = vector.broadcast %cst_65 : f32 to vector<1x16xf32>
    %142 = arith.mulf %140, %141 : vector<1x16xf32>
    %143 = tpu.concatenate %142, %142, %142, %142 in 1 : vector<1x16xf32>, vector<1x16xf32>, vector<1x16xf32>, vector<1x16xf32> -> vector<1x64xf32>
    %144 = vector.broadcast %143 : vector<1x64xf32> to vector<8x64xf32>
    %145 = arith.subf %129, %144 : vector<8x64xf32>
    %146 = arith.mulf %145, %145 : vector<8x64xf32>
    %cst_66 = arith.constant dense<0.000000e+00> : vector<64xf32>
    %147 = vector.multi_reduction <add>, %146, %cst_66 [0] : vector<8x64xf32> to vector<64xf32>
    %148 = vector.shape_cast %147 : vector<64xf32> to vector<1x64xf32>
    %149 = vector.extract_strided_slice %148 {offsets = [0, 0], sizes = [1, 16], strides = [1, 1]} : vector<1x64xf32> to vector<1x16xf32>
    %150 = vector.extract_strided_slice %148 {offsets = [0, 16], sizes = [1, 16], strides = [1, 1]} : vector<1x64xf32> to vector<1x16xf32>
    %151 = arith.addf %149, %150 : vector<1x16xf32>
    %152 = vector.extract_strided_slice %148 {offsets = [0, 32], sizes = [1, 16], strides = [1, 1]} : vector<1x64xf32> to vector<1x16xf32>
    %153 = arith.addf %151, %152 : vector<1x16xf32>
    %154 = vector.extract_strided_slice %148 {offsets = [0, 48], sizes = [1, 16], strides = [1, 1]} : vector<1x64xf32> to vector<1x16xf32>
    %155 = arith.addf %153, %154 : vector<1x16xf32>
    %cst_67 = arith.constant 3.125000e-02 : f32
    %156 = vector.broadcast %cst_67 : f32 to vector<1x16xf32>
    %157 = arith.mulf %155, %156 : vector<1x16xf32>
    %cst_68 = arith.constant 9.99999974E-6 : f32
    %158 = vector.broadcast %cst_68 : f32 to vector<1x16xf32>
    %159 = arith.addf %157, %158 : vector<1x16xf32>
    %160 = math.rsqrt %159 : vector<1x16xf32>
    %161 = arith.mulf %130, %160 : vector<1x16xf32>
    %162 = tpu.concatenate %161, %161, %161, %161 in 1 : vector<1x16xf32>, vector<1x16xf32>, vector<1x16xf32>, vector<1x16xf32> -> vector<1x64xf32>
    %163 = vector.broadcast %162 : vector<1x64xf32> to vector<8x64xf32>
    %164 = arith.mulf %145, %163 : vector<8x64xf32>
    %165 = tpu.concatenate %131, %131, %131, %131 in 1 : vector<1x16xf32>, vector<1x16xf32>, vector<1x16xf32>, vector<1x16xf32> -> vector<1x64xf32>
    %166 = vector.broadcast %165 : vector<1x64xf32> to vector<8x64xf32>
    %167 = arith.addf %164, %166 : vector<8x64xf32>
    %cst_69 = arith.constant 0.000000e+00 : f32
    %168 = vector.broadcast %cst_69 : f32 to vector<8x64xf32>
    %169 = arith.maximumf %167, %168 : vector<8x64xf32>
    %c544 = arith.constant 544 : index
    %c0_70 = arith.constant 0 : index
    %170 = vector.load %arg1[%c544, %c0_70] : memref<832x64xbf16, #tpu.memory_space<vmem>>, vector<64x32xbf16>
    %c608 = arith.constant 608 : index
    %c0_71 = arith.constant 0 : index
    %171 = vector.load %arg1[%c608, %c0_71] : memref<832x64xbf16, #tpu.memory_space<vmem>>, vector<64x32xbf16>
    %c672 = arith.constant 672 : index
    %c0_72 = arith.constant 0 : index
    %172 = vector.load %arg1[%c672, %c0_72] : memref<832x64xbf16, #tpu.memory_space<vmem>>, vector<64x32xbf16>
    %c736 = arith.constant 736 : index
    %c0_73 = arith.constant 0 : index
    %173 = vector.load %arg1[%c736, %c0_73] : memref<832x64xbf16, #tpu.memory_space<vmem>>, vector<64x32xbf16>
    %174 = vector.extract_strided_slice %169 {offsets = [0, 0], sizes = [1, 64], strides = [1, 1]} : vector<8x64xf32> to vector<1x64xf32>
    %175 = arith.truncf %174 : vector<1x64xf32> to vector<1x64xbf16>
    %cst_74 = arith.constant dense<0.000000e+00> : vector<1x32xf32>
    %176 = tpu.matmul %175, %170, %cst_74 {dimension_numbers = #tpu.dot_dimension_numbers<[1], [0], [0], [1], [0, 0, 1, 1], [], []>} : vector<1x64xbf16>, vector<64x32xbf16>, vector<1x32xf32> -> vector<1x32xf32>
    %177 = vector.extract_strided_slice %169 {offsets = [1, 0], sizes = [1, 64], strides = [1, 1]} : vector<8x64xf32> to vector<1x64xf32>
    %178 = arith.truncf %177 : vector<1x64xf32> to vector<1x64xbf16>
    %cst_75 = arith.constant dense<0.000000e+00> : vector<1x32xf32>
    %179 = tpu.matmul %178, %171, %cst_75 {dimension_numbers = #tpu.dot_dimension_numbers<[1], [0], [0], [1], [0, 0, 1, 1], [], []>} : vector<1x64xbf16>, vector<64x32xbf16>, vector<1x32xf32> -> vector<1x32xf32>
    %180 = arith.addf %176, %179 : vector<1x32xf32>
    %181 = vector.extract_strided_slice %169 {offsets = [2, 0], sizes = [1, 64], strides = [1, 1]} : vector<8x64xf32> to vector<1x64xf32>
    %182 = arith.truncf %181 : vector<1x64xf32> to vector<1x64xbf16>
    %cst_76 = arith.constant dense<0.000000e+00> : vector<1x32xf32>
    %183 = tpu.matmul %182, %172, %cst_76 {dimension_numbers = #tpu.dot_dimension_numbers<[1], [0], [0], [1], [0, 0, 1, 1], [], []>} : vector<1x64xbf16>, vector<64x32xbf16>, vector<1x32xf32> -> vector<1x32xf32>
    %184 = arith.addf %180, %183 : vector<1x32xf32>
    %185 = vector.extract_strided_slice %169 {offsets = [3, 0], sizes = [1, 64], strides = [1, 1]} : vector<8x64xf32> to vector<1x64xf32>
    %186 = arith.truncf %185 : vector<1x64xf32> to vector<1x64xbf16>
    %cst_77 = arith.constant dense<0.000000e+00> : vector<1x32xf32>
    %187 = tpu.matmul %186, %173, %cst_77 {dimension_numbers = #tpu.dot_dimension_numbers<[1], [0], [0], [1], [0, 0, 1, 1], [], []>} : vector<1x64xbf16>, vector<64x32xbf16>, vector<1x32xf32> -> vector<1x32xf32>
    %188 = arith.addf %184, %187 : vector<1x32xf32>
    %189 = vector.extract_strided_slice %169 {offsets = [4, 0], sizes = [1, 64], strides = [1, 1]} : vector<8x64xf32> to vector<1x64xf32>
    %190 = arith.truncf %189 : vector<1x64xf32> to vector<1x64xbf16>
    %cst_78 = arith.constant dense<0.000000e+00> : vector<1x32xf32>
    %191 = tpu.matmul %190, %170, %cst_78 {dimension_numbers = #tpu.dot_dimension_numbers<[1], [0], [0], [1], [0, 0, 1, 1], [], []>} : vector<1x64xbf16>, vector<64x32xbf16>, vector<1x32xf32> -> vector<1x32xf32>
    %192 = vector.extract_strided_slice %169 {offsets = [5, 0], sizes = [1, 64], strides = [1, 1]} : vector<8x64xf32> to vector<1x64xf32>
    %193 = arith.truncf %192 : vector<1x64xf32> to vector<1x64xbf16>
    %cst_79 = arith.constant dense<0.000000e+00> : vector<1x32xf32>
    %194 = tpu.matmul %193, %171, %cst_79 {dimension_numbers = #tpu.dot_dimension_numbers<[1], [0], [0], [1], [0, 0, 1, 1], [], []>} : vector<1x64xbf16>, vector<64x32xbf16>, vector<1x32xf32> -> vector<1x32xf32>
    %195 = arith.addf %191, %194 : vector<1x32xf32>
    %196 = vector.extract_strided_slice %169 {offsets = [6, 0], sizes = [1, 64], strides = [1, 1]} : vector<8x64xf32> to vector<1x64xf32>
    %197 = arith.truncf %196 : vector<1x64xf32> to vector<1x64xbf16>
    %cst_80 = arith.constant dense<0.000000e+00> : vector<1x32xf32>
    %198 = tpu.matmul %197, %172, %cst_80 {dimension_numbers = #tpu.dot_dimension_numbers<[1], [0], [0], [1], [0, 0, 1, 1], [], []>} : vector<1x64xbf16>, vector<64x32xbf16>, vector<1x32xf32> -> vector<1x32xf32>
    %199 = arith.addf %195, %198 : vector<1x32xf32>
    %200 = vector.extract_strided_slice %169 {offsets = [7, 0], sizes = [1, 64], strides = [1, 1]} : vector<8x64xf32> to vector<1x64xf32>
    %201 = arith.truncf %200 : vector<1x64xf32> to vector<1x64xbf16>
    %cst_81 = arith.constant dense<0.000000e+00> : vector<1x32xf32>
    %202 = tpu.matmul %201, %173, %cst_81 {dimension_numbers = #tpu.dot_dimension_numbers<[1], [0], [0], [1], [0, 0, 1, 1], [], []>} : vector<1x64xbf16>, vector<64x32xbf16>, vector<1x32xf32> -> vector<1x32xf32>
    %203 = arith.addf %199, %202 : vector<1x32xf32>
    %204 = tpu.concatenate %188, %203 in 0 : vector<1x32xf32>, vector<1x32xf32> -> vector<2x32xf32>
    %c6 = arith.constant 6 : index
    %c0_82 = arith.constant 0 : index
    %205 = vector.load %arg2[%c6, %c0_82] : memref<10x64xf32, #tpu.memory_space<vmem>>, vector<1x32xf32>
    %206 = vector.broadcast %205 : vector<1x32xf32> to vector<2x32xf32>
    %207 = arith.addf %204, %206 : vector<2x32xf32>
    %c7 = arith.constant 7 : index
    %c0_83 = arith.constant 0 : index
    %208 = vector.load %arg2[%c7, %c0_83] : memref<10x64xf32, #tpu.memory_space<vmem>>, vector<1x32xf32>
    %c8_84 = arith.constant 8 : index
    %c0_85 = arith.constant 0 : index
    %209 = vector.load %arg2[%c8_84, %c0_85] : memref<10x64xf32, #tpu.memory_space<vmem>>, vector<1x32xf32>
    %cst_86 = arith.constant dense<0.000000e+00> : vector<32xf32>
    %210 = vector.multi_reduction <add>, %207, %cst_86 [0] : vector<2x32xf32> to vector<32xf32>
    %211 = vector.shape_cast %210 : vector<32xf32> to vector<1x32xf32>
    %cst_87 = arith.constant 5.000000e-01 : f32
    %212 = vector.broadcast %cst_87 : f32 to vector<1x32xf32>
    %213 = arith.mulf %211, %212 : vector<1x32xf32>
    %214 = vector.broadcast %213 : vector<1x32xf32> to vector<2x32xf32>
    %215 = arith.subf %207, %214 : vector<2x32xf32>
    %216 = arith.mulf %215, %215 : vector<2x32xf32>
    %cst_88 = arith.constant dense<0.000000e+00> : vector<32xf32>
    %217 = vector.multi_reduction <add>, %216, %cst_88 [0] : vector<2x32xf32> to vector<32xf32>
    %218 = vector.shape_cast %217 : vector<32xf32> to vector<1x32xf32>
    %cst_89 = arith.constant 5.000000e-01 : f32
    %219 = vector.broadcast %cst_89 : f32 to vector<1x32xf32>
    %220 = arith.mulf %218, %219 : vector<1x32xf32>
    %cst_90 = arith.constant 9.99999974E-6 : f32
    %221 = vector.broadcast %cst_90 : f32 to vector<1x32xf32>
    %222 = arith.addf %220, %221 : vector<1x32xf32>
    %223 = math.rsqrt %222 : vector<1x32xf32>
    %224 = arith.mulf %208, %223 : vector<1x32xf32>
    %225 = vector.broadcast %224 : vector<1x32xf32> to vector<2x32xf32>
    %226 = arith.mulf %215, %225 : vector<2x32xf32>
    %227 = vector.broadcast %209 : vector<1x32xf32> to vector<2x32xf32>
    %228 = arith.addf %226, %227 : vector<2x32xf32>
    %cst_91 = arith.constant 0.000000e+00 : f32
    %229 = vector.broadcast %cst_91 : f32 to vector<2x32xf32>
    %230 = arith.maximumf %228, %229 : vector<2x32xf32>
    %c800 = arith.constant 800 : index
    %c0_92 = arith.constant 0 : index
    %231 = vector.load %arg1[%c800, %c0_92] : memref<832x64xbf16, #tpu.memory_space<vmem>>, vector<32x10xbf16>
    %232 = arith.truncf %230 : vector<2x32xf32> to vector<2x32xbf16>
    %cst_93 = arith.constant dense<0.000000e+00> : vector<2x10xf32>
    %233 = tpu.matmul %232, %231, %cst_93 {dimension_numbers = #tpu.dot_dimension_numbers<[1], [0], [0], [1], [0, 0, 1, 1], [], []>} : vector<2x32xbf16>, vector<32x10xbf16>, vector<2x10xf32> -> vector<2x10xf32>
    %c9 = arith.constant 9 : index
    %c0_94 = arith.constant 0 : index
    %234 = vector.load %arg2[%c9, %c0_94] : memref<10x64xf32, #tpu.memory_space<vmem>>, vector<1x10xf32>
    %235 = vector.broadcast %234 : vector<1x10xf32> to vector<2x10xf32>
    %236 = arith.addf %233, %235 : vector<2x10xf32>
    %c0_95 = arith.constant 0 : index
    %c0_96 = arith.constant 0 : index
    %237 = vector.load %arg3[%c0_95, %c0_96] : memref<2x10xf32, #tpu.memory_space<vmem>>, vector<2x10xf32>
    tpu.vector_store %arg3[%c0_95, %c0_96], %236 {strides = array<i32>} : memref<2x10xf32, #tpu.memory_space<vmem>>, vector<2x10xf32>,
    return
  }
}

</mosaic_0001>

<bundles_post_ra>
// kernel: tile.13
= control target key start
LH: loop header
LB: loop body
LE: loop exit
PB: predicated region body
PF: predicated region fallthrough
CT: control target
= control target key end

     0   :  { %s22_s0 = inlined_call_operand.vmem [shape: f32[8], index: 0, kind: input, shape index: {}]   ;;  %s23_s1 = inlined_call_operand.vmem [shape: f32[8,8], index: 1, kind: output, shape index: {}]  }
   0x1   :  { %v4_v0 = vld [vmem:[%s22_s0] ss:$0 sm:$0xff] }
   0x2   :  { %5 = vst [vmem:[%s23_s1] sm:$0xff] %v4_v0 }

// kernel: tile.18
= control target key start
LH: loop header
LB: loop body
LE: loop exit
PB: predicated region body
PF: predicated region fallthrough
CT: control target
= control target key end

     0   :  { %s22_s0 = inlined_call_operand.vmem [shape: f32[16], index: 0, kind: input, shape index: {}]   ;;  %s23_s1 = inlined_call_operand.vmem [shape: f32[4,16], index: 1, kind: output, shape index: {}]  }
   0x1   :  { %v4_v0 = vld [vmem:[%s22_s0] ss:$0 sm:$0xff] }
   0x2   :  { %5 = vst [vmem:[%s23_s1] sm:$0xf] %v4_v0 }

// kernel: cnn_encoder_forward.1
= control target key start
LH: loop header
LB: loop body
LE: loop exit
PB: predicated region body
PF: predicated region fallthrough
CT: control target
= control target key end

     0   :  { %v2644_v1 = vmov 0.0   ;;  %vm2645_vm0 = vmmov 0   ;;  %vm85_vm1 = vcmask 1043456   ;;  %vm81_vm2 = vcmask 588800   ;;  %s3300_s0 = inlined_call_operand.vmem [shape: bf16[64,72], index: 0, kind: input, shape index: {}]   ;;  %s3301_s1 = inlined_call_operand.vmem [shape: bf16[832,64], index: 1, kind: input, shape index: {}]   ;;  %s3302_s2 = inlined_call_operand.vmem [shape: f32[10,64], index: 2, kind: input, shape index: {}]   ;;  %s3303_s3 = inlined_call_operand.hbm [shape: f32[2,10], index: 3, kind: output, shape index: {}]  }
   0x1   :  { %v2684_v0 = vld [vmem:[%s3301_s1 + $0x24] sm:$0xff]   ;;  %2183 = vmatprep.subr.bf16.mxu0 %v2644_v1  ;;  %2197 = vmatprep.subr.bf16.mxu1 %v2644_v1  ;;  %v2697_v3 = vld [vmem:[%s3301_s1 + $0x2c] sm:$0xff]   ;;  %v2715_v5 = vld [vmem:[%s3301_s1 + $0x34] sm:$0xff]  }
   0x2   :  { %v2691_v2 = vld [vmem:[%s3301_s1] sm:$0xff]   ;;  %2184 = vmatpush3.bf16.msra.mxu0 %v2684_v0  ;;  %v2704_v4 = vld [vmem:[%s3301_s1 + $0x8] sm:$0xff]   ;;  %2193 = vmatprep.mubr.msk.bf16.mxu0 %vm2645_vm0, %v2644_v1  ;;  %v2722_v6 = vld [vmem:[%s3301_s1 + $0x10] sm:$0xff]  }
   0x3   :  { %2198 = vmatpush3.bf16.msra.mxu1 %v2691_v2  ;;  %2185 = vmatprep.subr.bf16.mxu0 %v2644_v1  ;;  %v2728_v7 = vld [vmem:[%s3301_s1 + $0x3c] sm:$0xff]   ;;  %v2568_v9 = vld [vmem:[%s3301_s1 + $0x44] ss:$0 sps:$4 sm:$0xff]   ;;  %v2761_v14 = vld [vmem:[%s3301_s1 + $0x48] sm:$0xff]  }
   0x4   :  { %2199 = vmatprep.subr.bf16.mxu1 %v2644_v1  ;;  %2207 = vmatprep.mubr.msk.bf16.mxu1 %vm2645_vm0, %v2644_v1  ;;  %v2734_v8 = vld [vmem:[%s3301_s1 + $0x18] sm:$0xff]   ;;  %v2569_v10 = vld [vmem:[%s3301_s1 + $0x20] ss:$0 sps:$4 sm:$0xff]   ;;  %v2749_v11 = vsel %vm85_vm1, %v2568_v9, 0  ;;  %v53_v13 = vld [vmem:[%s3300_s0 + $0x4] sm:$0xf] }
   0x5   :  { %v2753_v12 = vsel %vm85_vm1, %v2569_v10, 0  ;;  %v2578_v15 = vld [vmem:[%s3301_s1 + $0x68] ss:$0 sps:$4 sm:$0xff]   ;;  %v52_v16 = vld [vmem:[%s3300_s0] sm:$0xf]  ;;  %v2775_v17 = vld [vmem:[%s3301_s1 + $0x6c] sm:$0xff]  }
   0x6   :  { %2186 = vmatpush3.bf16.msra.mxu0 %v2697_v3  ;;  %v2579_v18 = vld [vmem:[%s3301_s1 + $0x8c] ss:$0 sps:$4 sm:$0xff]   ;;  %v2785_v19 = vld [vmem:[%s3301_s1 + $0x50] sm:$0xff]   ;;  %v2793_v21 = vsel %vm85_vm1, %v2578_v15, 0  ;;  %v2574_v23 = vld [vmem:[%s3301_s1 + $0x58] sm:$0xff]  }
   0x7   :  { %2200 = vmatpush3.bf16.msra.mxu1 %v2704_v4  ;;  %2187 = vmatprep.subr.bf16.mxu0 %v2644_v1  ;;  %v2790_v20 = vld [vmem:[%s3301_s1 + $0x74] sm:$0xff]   ;;  %v2796_v22 = vsel %vm85_vm1, %v2579_v18, 0  ;;  %v2575_v24 = vld [vmem:[%s3301_s1 + $0x7c] sm:$0xff]   ;;  %v2577_v26 = vld [vmem:[%s3301_s1 + $0x84] sm:$0xff]  }
   0x8   :  { %2201 = vmatprep.subr.bf16.mxu1 %v2644_v1  ;;  %v2576_v25 = vld [vmem:[%s3301_s1 + $0x60] sm:$0xff]   ;;  %v202_v27 = vld [vmem:[%s3300_s0 + $0x8] sm:$0xf]  ;;  %v277_v28 = vld [vmem:[%s3300_s0 + $0xc] sm:$0xf] }
   0xa   :  { %2188 = vmatpush3.bf16.msra.mxu0 %v2715_v5 }
   0xb   :  { %2202 = vmatpush3.bf16.msra.mxu1 %v2722_v6  ;;  %2189 = vmatprep.subr.bf16.mxu0 %v2644_v1 }
   0xc   :  { %2203 = vmatprep.subr.bf16.mxu1 %v2644_v1 }
   0xe   :  { %2190 = vmatpush3.bf16.msra.mxu0 %v2728_v7 }
   0xf   :  { %2204 = vmatpush3.bf16.msra.mxu1 %v2734_v8  ;;  %2191 = vmatprep.subr.bf16.mxu0 %v2644_v1 }
  0x10   :  { %2205 = vmatprep.subr.bf16.mxu1 %v2644_v1 }
  0x12   :  { %2192 = vmatpush3.bf16.msra.mxu0 %v2749_v11 }
  0x13   :  { %2206 = vmatpush3.bf16.msra.mxu1 %v2753_v12  ;;  %2211 = vmatprep.subr.bf16.mxu0 %v2644_v1 }
  0x14   :  { %2225 = vmatprep.subr.bf16.mxu1 %v2644_v1 }
  0x15   :  { %2194 = vmatmul.mubr.msk.bf16.vlgmr.msra.gmra.mrb[0].mxu0 %vm81_vm2, %v53_v13 }
  0x16   :  { %2208 = vmatmul.mubr.msk.bf16.vlgmr.msra.gmra.mrb[0].mxu1 %vm81_vm2, %v52_v16  ;;  %2212 = vmatpush3.bf16.msra.mxu0 %v2761_v14 }
  0x17   :  { %2226 = vmatpush3.bf16.msra.mxu1 %v2775_v17  ;;  %2213 = vmatprep.subr.bf16.mxu0 %v2644_v1 }
  0x18   :  { %2227 = vmatprep.subr.bf16.mxu1 %v2644_v1  ;;  %2221 = vmatprep.mubr.msk.bf16.mxu0 %vm2645_vm0, %v2644_v1 }
  0x19   :  { %2235 = vmatprep.mubr.msk.bf16.mxu1 %vm2645_vm0, %v2644_v1 }
  0x1a   :  { %2214 = vmatpush3.bf16.msra.mxu0 %v2785_v19 }
  0x1b   :  { %2228 = vmatpush3.bf16.msra.mxu1 %v2790_v20  ;;  %2215 = vmatprep.subr.bf16.mxu0 %v2644_v1 }
  0x1c   :  { %2229 = vmatprep.subr.bf16.mxu1 %v2644_v1 }
  0x1e   :  { %2216 = vmatpush3.bf16.msra.mxu0 %v2574_v23 }
  0x1f   :  { %2230 = vmatpush3.bf16.msra.mxu1 %v2575_v24  ;;  %2217 = vmatprep.subr.bf16.mxu0 %v2644_v1 }
  0x20   :  { %2231 = vmatprep.subr.bf16.mxu1 %v2644_v1 }
  0x22   :  { %2218 = vmatpush3.bf16.msra.mxu0 %v2576_v25 }
  0x23   :  { %2232 = vmatpush3.bf16.msra.mxu1 %v2577_v26  ;;  %2219 = vmatprep.subr.bf16.mxu0 %v2644_v1 }
  0x24   :  { %2233 = vmatprep.subr.bf16.mxu1 %v2644_v1 }
  0x26   :  { %2220 = vmatpush3.bf16.msra.mxu0 %v2793_v21 }
  0x27   :  { %2234 = vmatpush3.bf16.msra.mxu1 %v2796_v22  ;;  %2239 = vmatprep.subr.bf16.mxu0 %v2644_v1 }
  0x28   :  { %2253 = vmatprep.subr.bf16.mxu1 %v2644_v1 }
  0x29   :  { %2222 = vmatmul.mubr.msk.bf16.vlgmr.msra.gmra.mrb[4].mxu0 %vm81_vm2, %v202_v27 }
  0x2a   :  { %2236 = vmatmul.mubr.msk.bf16.vlgmr.msra.gmra.mrb[4].mxu1 %vm81_vm2, %v277_v28  ;;  %2240 = vmatpush3.bf16.msra.mxu0 %v2684_v0 }
  0x2b   :  { %2254 = vmatpush3.bf16.msra.mxu1 %v2691_v2  ;;  %2241 = vmatprep.subr.bf16.mxu0 %v2644_v1 }
  0x2c   :  { %2255 = vmatprep.subr.bf16.mxu1 %v2644_v1  ;;  %2249 = vmatprep.mubr.msk.bf16.mxu0 %vm2645_vm0, %v2644_v1 }
  0x2d   :  { %8 = vsyncpa [#allocation4], 0  ;;  %2263 = vmatprep.mubr.msk.bf16.mxu1 %vm2645_vm0, %v2644_v1  ;;  %v353_v29 = vld [vmem:[%s3300_s0 + $0x14] sm:$0xf]  ;;  %v352_v30 = vld [vmem:[%s3300_s0 + $0x10] sm:$0xf] }
  0x2e   :  { %2242 = vmatpush3.bf16.msra.mxu0 %v2697_v3  ;;  %v440_v31 = vld [vmem:[%s3300_s0 + $0x18] sm:$0xf]  ;;  %v485_v32 = vld [vmem:[%s3300_s0 + $0x1c] sm:$0xf]  ;;  %vm539_vm3 = vcmask 523264   ;;  %s2646_s15 = smov 104  }
  0x2f   :  { %2256 = vmatpush3.bf16.msra.mxu1 %v2704_v4  ;;  %2243 = vmatprep.subr.bf16.mxu0 %v2644_v1  ;;  %737 = vst.msk [vmem:[#allocation2] sm:$0xff] %vm539_vm3, %v2644_v1  ;;  %738 = vst.msk [vmem:[#allocation2 + $0x8] sm:$0xff] %vm539_vm3, %v2644_v1  ;;  %v1996_v61 = vld [vmem:[%s3302_s2] ss:$0 sm:$0xff]  ;;  %s2647_s16 = smov 120   ;;  %s2648_s17 = smov 96  }
  0x30   :  { %2257 = vmatprep.subr.bf16.mxu1 %v2644_v1  ;;  %s2649_s18 = smov 112   ;;  %s2650_s19 = smov 80   ;;  %vm601_vm4 = vcmask 64512   ;;  %vm603_vm5 = vcmask 130048   ;;  %vm605_vm6 = vcmask 195584   ;;  %vm607_vm7 = vcmask 261120  }
  0x31   :  { %s2651_s20 = smov 88   ;;  %s2652_s21 = smov 72   ;;  %vm609_vm8 = vcmask 326656   ;;  %vm611_vm9 = vcmask 392192   ;;  %vm613_vm10 = vcmask 457728   ;;  %vm739_vm11 = vcmask 519168  }
  0x32   :  { %2244 = vmatpush3.bf16.msra.mxu0 %v2715_v5  ;;  %s2653_s22 = smov 16   ;;  %s2654_s23 = smov 8   ;;  %740 = vst.msk [vmem:[#allocation2 + $0x10] sm:$0xf] %vm739_vm11, %v2644_v1  ;;  %vm1844_vm12 = vcmask 1040384   ;;  %vm1854_vm13 = vcmask 254976  }
  0x33   :  { %2258 = vmatpush3.bf16.msra.mxu1 %v2722_v6  ;;  %2245 = vmatprep.subr.bf16.mxu0 %v2644_v1  ;;  %s2655_s24 = smov 32   ;;  %s2656_s25 = smov 24   ;;  %vm1952_vm14 = vcmask 74752  }
  0x34   :  { %2259 = vmatprep.subr.bf16.mxu1 %v2644_v1  ;;  %s2657_s26 = smov 48   ;;  %s2658_s27 = smov 40  }
  0x35   :  { %s2659_s28 = smov 56   ;;  %s2660_s9 = smov [#allocation3]  }
  0x36   :  { %2246 = vmatpush3.bf16.msra.mxu0 %v2728_v7  ;;  %s1960_s10 = sshll.u32 %s2660_s9, 4  ;;  %s1961_s10 = int_to_ptr.vmem [resolvable:$true] %s1960_s10 }
  0x37   :  { %2260 = vmatpush3.bf16.msra.mxu1 %v2734_v8  ;;  %2247 = vmatprep.subr.bf16.mxu0 %v2644_v1  ;;  %s2620_s11 = scalar_lea.vmem %s1961_s10, 32  ;;  %p2625_p1 = scmp.lt.s32.totalorder %s1961_s10, %s1961_s10 }
  0x38   :  { %2261 = vmatprep.subr.bf16.mxu1 %v2644_v1  ;;  %p2621_p0 = scmp.ne.s32.totalorder %s1961_s10, %s2620_s11  ;;  %p2626_p2 = scmp.lt.s32.totalorder %s2620_s11, %s2620_s11 }
  0x3a   :  { %2248 = vmatpush3.bf16.msra.mxu0 %v2749_v11  ;;  %p2627_p3 = por %p2626_p2, %p2625_p1 }
  0x3b   :  { %2262 = vmatpush3.bf16.msra.mxu1 %v2753_v12  ;;  %2267 = vmatprep.subr.bf16.mxu0 %v2644_v1 }
  0x3c   :  { %2281 = vmatprep.subr.bf16.mxu1 %v2644_v1  ;;  %p2628_p4 = pnand %p2627_p3, %p2621_p0 }
  0x3d   :  { %2250 = vmatmul.mubr.msk.bf16.vlgmr.msra.gmra.mrb[8].mxu0 %vm81_vm2, %v353_v29 }
  0x3e   :  { %2264 = vmatmul.mubr.msk.bf16.vlgmr.msra.gmra.mrb[8].mxu1 %vm81_vm2, %v352_v30  ;;  %2268 = vmatpush3.bf16.msra.mxu0 %v2761_v14 }
  0x3f   :  { %2282 = vmatpush3.bf16.msra.mxu1 %v2775_v17  ;;  %2269 = vmatprep.subr.bf16.mxu0 %v2644_v1 }
  0x40   :  { %2283 = vmatprep.subr.bf16.mxu1 %v2644_v1  ;;  %2277 = vmatprep.mubr.msk.bf16.mxu0 %vm2645_vm0, %v2644_v1 }
  0x41   :  { %2291 = vmatprep.mubr.msk.bf16.mxu1 %vm2645_vm0, %v2644_v1 }
  0x42   :  { %2270 = vmatpush3.bf16.msra.mxu0 %v2785_v19 }
  0x43   :  { %2284 = vmatpush3.bf16.msra.mxu1 %v2790_v20  ;;  %2271 = vmatprep.subr.bf16.mxu0 %v2644_v1 }
  0x44   :  { %2285 = vmatprep.subr.bf16.mxu1 %v2644_v1 }
  0x46   :  { %2272 = vmatpush3.bf16.msra.mxu0 %v2574_v23 }
  0x47   :  { %2286 = vmatpush3.bf16.msra.mxu1 %v2575_v24  ;;  %2273 = vmatprep.subr.bf16.mxu0 %v2644_v1 }
  0x48   :  { %2287 = vmatprep.subr.bf16.mxu1 %v2644_v1 }
  0x4a   :  { %2274 = vmatpush3.bf16.msra.mxu0 %v2576_v25 }
  0x4b   :  { %2288 = vmatpush3.bf16.msra.mxu1 %v2577_v26  ;;  %2275 = vmatprep.subr.bf16.mxu0 %v2644_v1 }
  0x4c   :  { %2289 = vmatprep.subr.bf16.mxu1 %v2644_v1 }
  0x4e   :  { %2276 = vmatpush3.bf16.msra.mxu0 %v2793_v21 }
  0x4f   :  { %2290 = vmatpush3.bf16.msra.mxu1 %v2796_v22  ;;  %2295 = vmatprep.subr.bf16.mxu0 %v2644_v1 }
  0x50   :  { %2343 = vmatprep.subr.bf16.mxu1 %v2644_v1 }
  0x51   :  { %2278 = vmatmul.mubr.msk.bf16.vlgmr.msra.gmra.mrb[12].mxu0 %vm81_vm2, %v440_v31 }
  0x52   :  { %2292 = vmatmul.mubr.msk.bf16.vlgmr.msra.gmra.mrb[12].mxu1 %vm81_vm2, %v485_v32  ;;  %2303 = vmatprep.mubr.msk.bf16.mxu0 %vm2645_vm0, %v2644_v1 }
  0x53   :  { %2351 = vmatprep.mubr.msk.bf16.mxu1 %vm2645_vm0, %v2644_v1 }
  0xe8   :  { %v123_v33 = vpop.f32.mrb[0].mxu0 }
  0xe9   :  { %v196_v34 = vpop.f32.mrb[0].mxu1  ;;  %v2195_v35 = vpop.f32.mrb[1].mxu0 }
  0xea   :  { %v197_v36 = vadd.f32 %v196_v34, %v123_v33  ;;  %v2209_v37 = vpop.f32.mrb[1].mxu1  ;;  %v126_v38 = vpop.f32.mrb[2].mxu0 }
  0xeb   :  { %v199_v39 = vpop.f32.mrb[2].mxu1  ;;  %v2196_v40 = vpop.f32.mrb[3].mxu0  ;;  %v615_v38 = vlaneseq }
  0xec   :  { %v2210_v41 = vpop.f32.mrb[3].mxu1 }
  0xfc   :  { %v270_v42 = vpop.f32.mrb[4].mxu0 }
  0xfd   :  { %v276_v43 = vadd.f32 %v270_v42, %v197_v36  ;;  %v345_v44 = vpop.f32.mrb[4].mxu1  ;;  %v2223_v45 = vpop.f32.mrb[5].mxu0 }
  0xfe   :  { %v2237_v46 = vpop.f32.mrb[5].mxu1  ;;  %v273_v47 = vpop.f32.mrb[6].mxu0 }
  0xff   :  { %v351_v48 = vadd.f32 %v345_v44, %v276_v43  ;;  %v348_v49 = vpop.f32.mrb[6].mxu1  ;;  %v2224_v50 = vpop.f32.mrb[7].mxu0  ;;  %v616_v43 = vshrl.u32 %v615_v38, 7 }
 0x100   :  { %v2238_v51 = vpop.f32.mrb[7].mxu1 }
 0x101   :  { %v2910_v5 = vadd.f32 %v1996_v61, %v351_v48  ;;  %v2937_v48 = vsub.s32 0, %v616_v43 }
 0x103   :  { %v540_v11 = vsel %vm539_vm3, %v2910_v5, 0.0 }
 0x110   :  { %v391_v52 = vpop.f32.mrb[8].mxu0 }
 0x111   :  { %v434_v53 = vpop.f32.mrb[8].mxu1  ;;  %v2251_v54 = vpop.f32.mrb[9].mxu0 }
 0x112   :  { %v435_v55 = vadd.f32 %v434_v53, %v391_v52  ;;  %v2265_v56 = vpop.f32.mrb[9].mxu1  ;;  %v394_v57 = vpop.f32.mrb[10].mxu0 }
 0x113   :  { %v437_v58 = vpop.f32.mrb[10].mxu1  ;;  %v2252_v59 = vpop.f32.mrb[11].mxu0 }
 0x114   :  { %v2266_v60 = vpop.f32.mrb[11].mxu1 }
 0x124   :  { %v478_v62 = vpop.f32.mrb[12].mxu0 }
 0x125   :  { %v484_v63 = vadd.f32 %v478_v62, %v435_v55  ;;  %v523_v0 = vpop.f32.mrb[12].mxu1  ;;  %v2279_v2 = vpop.f32.mrb[13].mxu0 }
 0x126   :  { %v2293_v3 = vpop.f32.mrb[13].mxu1  ;;  %v481_v4 = vpop.f32.mrb[14].mxu0 }
 0x127   :  { %v529_v6 = vadd.f32 %v523_v0, %v484_v63  ;;  %v526_v7 = vpop.f32.mrb[14].mxu1  ;;  %v2280_v8 = vpop.f32.mrb[15].mxu0  ;;  %v2964_v3 = vld [vmem:[%s3302_s2 + $0x2] sm:$0x1] }
 0x128   :  { %v2294_v9 = vpop.f32.mrb[15].mxu1 }
 0x129   :  { %v2912_v10 = vadd.f32 %v1996_v61, %v529_v6 }
 0x12b   :  { %v541_v12 = vsel %vm539_vm3, %v2912_v10, 0.0 }
 0x12c   :  { %v542_v13 = vadd.f32 %v541_v12, %v540_v11 }
 0x12e   :  { %v543_v14 = vrot.slane %v542_v13, 4 }
 0x130   :  { %v544_v15 = vadd.f32 %v543_v14, %v542_v13 }
 0x132   :  { %v545_v16 = vrot.slane %v544_v15, 2 }
 0x134   :  { %v546_v17 = vadd.f32 %v545_v16, %v544_v15 }
 0x136   :  { %v547_v18 = vrot.slane %v546_v17, 1 }
 0x138   :  { %v548_v19 = vadd.f32 %v547_v18, %v546_v17 }
 0x13a   :  { %558 = vrot.lane.b32.xlu1 %v548_v19, %s2646_s15  ;;  %550 = vrot.lane.b32.xlu0 %v548_v19, %s2647_s16 }
 0x13e   :  { %562 = vrot.lane.b32.xlu1 %v548_v19, %s2648_s17  ;;  %554 = vrot.lane.b32.xlu0 %v548_v19, %s2649_s18 }
 0x142   :  { %570 = vrot.lane.b32.xlu1 %v548_v19, %s2650_s19  ;;  %566 = vrot.lane.b32.xlu0 %v548_v19, %s2651_s20 }
 0x146   :  { %574 = vrot.lane.b32.xlu0 %v548_v19, %s2652_s21 }
 0x1ac   :  { %v559_v20 = vpop.permute.xlu1 %558  ;;  %v551_v21 = vpop.permute.xlu0 %550 }
 0x1ad   :  { %v553_v22 = vadd.f32 %v551_v21, %v548_v19 }
 0x1b0   :  { %v555_v23 = vpop.permute.xlu0 %554  ;;  %v563_v25 = vpop.permute.xlu1 %562 }
 0x1b1   :  { %v557_v24 = vadd.f32 %v555_v23, %v553_v22  ;;  %v2580_v23 = vld [vmem:[%s3301_s1 + $0xb0] sm:$0xff]  }
 0x1b2   :  { %2296 = vmatpush3.bf16.msra.mxu0 %v2580_v23  ;;  %2344 = vmatpush3.bf16.msra.mxu1 %v2580_v23  ;;  %v2594_v23 = vld [vmem:[%s3301_s1 + $0x100] sm:$0xff]  }
 0x1b3   :  { %v561_v26 = vadd.f32 %v559_v20, %v557_v24  ;;  %v537_v20 = vld [vmem:[%s3302_s2 + $0x1] sm:$0x1]  ;;  %2297 = vmatprep.subr.bf16.mxu0 %v2644_v1  ;;  %2345 = vmatprep.subr.bf16.mxu1 %v2644_v1  ;;  %v2581_v24 = vld [vmem:[%s3301_s1 + $0xb8] sm:$0xff]  }
 0x1b4   :  { %v567_v27 = vpop.permute.xlu0 %566  ;;  %v571_v30 = vpop.permute.xlu1 %570 }
 0x1b5   :  { %v565_v28 = vadd.f32 %v563_v25, %v561_v26  ;;  %v2582_v25 = vld [vmem:[%s3301_s1 + $0xc0] sm:$0xff]   ;;  %v2583_v26 = vld [vmem:[%s3301_s1 + $0xc8] sm:$0xff]  }
 0x1b6   :  { %2298 = vmatpush3.bf16.msra.mxu0 %v2581_v24  ;;  %2346 = vmatpush3.bf16.msra.mxu1 %v2581_v24  ;;  %v2595_v24 = vld [vmem:[%s3301_s1 + $0x108] sm:$0xff]  }
 0x1b7   :  { %v569_v29 = vadd.f32 %v567_v27, %v565_v28  ;;  %2299 = vmatprep.subr.bf16.mxu0 %v2644_v1  ;;  %2347 = vmatprep.subr.bf16.mxu1 %v2644_v1 }
 0x1b8   :  { %v575_v32 = vpop.permute.xlu0 %574 }
 0x1b9   :  { %v573_v31 = vadd.f32 %v571_v30, %v569_v29 }
 0x1ba   :  { %2300 = vmatpush3.bf16.msra.mxu0 %v2582_v25  ;;  %2348 = vmatpush3.bf16.msra.mxu1 %v2582_v25 }
 0x1bb   :  { %v577_v33 = vadd.f32 %v575_v32, %v573_v31  ;;  %2301 = vmatprep.subr.bf16.mxu0 %v2644_v1  ;;  %2349 = vmatprep.subr.bf16.mxu1 %v2644_v1 }
 0x1bd   :  { %v578_v34 = vmul.f32 0.0078125, %v577_v33 }
 0x1be   :  { %2302 = vmatpush3.bf16.msra.mxu0 %v2583_v26  ;;  %2350 = vmatpush3.bf16.msra.mxu1 %v2583_v26 }
 0x1bf   :  { %583 = vrot.lane.b32.xlu0 %v578_v34, %s2653_s22  ;;  %580 = vrot.lane.b32.xlu1 %v578_v34, %s2654_s23 }
 0x1c0   :  { %2307 = vmatprep.subr.bf16.mxu0 %v2644_v1  ;;  %2355 = vmatprep.subr.bf16.mxu1 %v2644_v1 }
 0x1c3   :  { %589 = vrot.lane.b32.xlu0 %v578_v34, %s2655_s24  ;;  %586 = vrot.lane.b32.xlu1 %v578_v34, %s2656_s25 }
 0x1c7   :  { %595 = vrot.lane.b32.xlu0 %v578_v34, %s2657_s26  ;;  %592 = vrot.lane.b32.xlu1 %v578_v34, %s2658_s27 }
 0x1cb   :  { %598 = vrot.lane.b32.xlu1 %v578_v34, %s2659_s28 }
 0x231   :  { %v584_v35 = vpop.permute.xlu0 %583  ;;  %v581_v36 = vpop.permute.xlu1 %580 }
 0x232   :  { %v602_v37 = vsel %vm601_vm4, %v578_v34, %v581_v36 }
 0x233   :  { %v604_v40 = vsel %vm603_vm5, %v602_v37, %v584_v35 }
 0x235   :  { %v590_v39 = vpop.permute.xlu0 %589  ;;  %v587_v41 = vpop.permute.xlu1 %586 }
 0x236   :  { %v606_v42 = vsel %vm605_vm6, %v604_v40, %v587_v41 }
 0x237   :  { %v608_v44 = vsel %vm607_vm7, %v606_v42, %v590_v39 }
 0x239   :  { %v593_v45 = vpop.permute.xlu1 %592  ;;  %v596_v46 = vpop.permute.xlu0 %595 }
 0x23a   :  { %v610_v47 = vsel %vm609_vm8, %v608_v44, %v593_v45 }
 0x23b   :  { %v612_v49 = vsel %vm611_vm9, %v610_v47, %v596_v46 }
 0x23d   :  { %v599_v50 = vpop.permute.xlu1 %598 }
 0x23e   :  { %v614_v51 = vsel %vm613_vm10, %v612_v49, %v599_v50 }
 0x23f   :  { %v618_v52 = vrot.slane %v614_v51, %v2937_v48 }
 0x241   :  { %v2943_v53 = vsub.f32 %v2910_v5, %v618_v52  ;;  %v2946_v54 = vsub.f32 %v2912_v10, %v618_v52 }
 0x243   :  { %v621_v55 = vmul.f32 %v2943_v53, %v2943_v53  ;;  %v622_v56 = vmul.f32 %v2946_v54, %v2946_v54 }
 0x245   :  { %v623_v57 = vsel %vm539_vm3, %v621_v55, 0.0  ;;  %v624_v58 = vsel %vm539_vm3, %v622_v56, 0.0 }
 0x246   :  { %v625_v59 = vadd.f32 %v624_v58, %v623_v57 }
 0x248   :  { %v626_v60 = vrot.slane %v625_v59, 4 }
 0x24a   :  { %v627_v61 = vadd.f32 %v626_v60, %v625_v59 }
 0x24c   :  { %v628_v62 = vrot.slane %v627_v61, 2 }
 0x24e   :  { %v629_v63 = vadd.f32 %v628_v62, %v627_v61 }
 0x250   :  { %v630_v0 = vrot.slane %v629_v63, 1 }
 0x252   :  { %v631_v2 = vadd.f32 %v630_v0, %v629_v63 }
 0x254   :  { %637 = vrot.lane.b32.xlu1 %v631_v2, %s2649_s18  ;;  %633 = vrot.lane.b32.xlu0 %v631_v2, %s2647_s16 }
 0x258   :  { %645 = vrot.lane.b32.xlu1 %v631_v2, %s2648_s17  ;;  %641 = vrot.lane.b32.xlu0 %v631_v2, %s2646_s15 }
 0x25c   :  { %653 = vrot.lane.b32.xlu1 %v631_v2, %s2650_s19  ;;  %649 = vrot.lane.b32.xlu0 %v631_v2, %s2651_s20 }
 0x260   :  { %657 = vrot.lane.b32.xlu0 %v631_v2, %s2652_s21 }
 0x264   :  { %701 = vrot.lane.b32.xlu0 %v2964_v3, %s2654_s23 }
 0x268   :  { %704 = vrot.lane.b32.xlu0 %v2964_v3, %s2653_s22 }
 0x26c   :  { %707 = vrot.lane.b32.xlu0 %v2964_v3, %s2656_s25 }
 0x270   :  { %710 = vrot.lane.b32.xlu0 %v2964_v3, %s2655_s24 }
 0x2c6   :  { %v638_v4 = vpop.permute.xlu1 %637  ;;  %v634_v5 = vpop.permute.xlu0 %633 }
 0x2c7   :  { %v636_v6 = vadd.f32 %v634_v5, %v631_v2 }
 0x2c9   :  { %v640_v7 = vadd.f32 %v638_v4, %v636_v6 }
 0x2ca   :  { %v646_v8 = vpop.permute.xlu1 %645  ;;  %v642_v9 = vpop.permute.xlu0 %641 }
 0x2cb   :  { %v644_v10 = vadd.f32 %v642_v9, %v640_v7  ;;  %v2586_v7 = vld [vmem:[%s3301_s1 + $0xa0] sm:$0xff]  }
 0x2cd   :  { %v648_v11 = vadd.f32 %v646_v8, %v644_v10  ;;  %v2587_v8 = vld [vmem:[%s3301_s1 + $0xa8] sm:$0xff]  }
 0x2ce   :  { %v650_v12 = vpop.permute.xlu0 %649  ;;  %v654_v14 = vpop.permute.xlu1 %653 }
 0x2cf   :  { %v652_v13 = vadd.f32 %v650_v12, %v648_v11  ;;  %v2588_v11 = vld [vmem:[%s3301_s1 + $0xd0] sm:$0xff]  }
 0x2d1   :  { %v656_v15 = vadd.f32 %v654_v14, %v652_v13  ;;  %v2589_v14 = vld [vmem:[%s3301_s1 + $0xd8] sm:$0xff]  }
 0x2d2   :  { %v658_v16 = vpop.permute.xlu0 %657 }
 0x2d3   :  { %v660_v17 = vadd.f32 %v658_v16, %v656_v15  ;;  %v2590_v15 = vld [vmem:[%s3301_s1 + $0xe0] sm:$0xff]   ;;  %v2591_v16 = vld [vmem:[%s3301_s1 + $0xe8] sm:$0xff]  }
 0x2d5   :  { %v661_v18 = vmul.f32 0.0078125, %v660_v17 }
 0x2d6   :  { %v702_v27 = vpop.permute.xlu0 %701 }
 0x2d7   :  { %v662_v19 = vadd.f32 1e-05, %v661_v18  ;;  %v722_v34 = vsel %vm601_vm4, %v2964_v3, %v702_v27 }
 0x2d9   :  { %2614 = vrsqrt.f32 %v662_v19  ;;  %v2592_v19 = vld [vmem:[%s3301_s1 + $0xf0] sm:$0xff]  }
 0x2da   :  { %v705_v28 = vpop.permute.xlu0 %704 }
 0x2db   :  { %v723_v38 = vsel %vm603_vm5, %v722_v34, %v705_v28 }
 0x2de   :  { %v708_v30 = vpop.permute.xlu0 %707 }
 0x2df   :  { %v724_v42 = vsel %vm605_vm6, %v723_v38, %v708_v30 }
 0x2e2   :  { %v711_v32 = vpop.permute.xlu0 %710 }
 0x2e3   :  { %v2615_v21 = vpop.eup %2614  ;;  %v725_v49 = vsel %vm607_vm7, %v724_v42, %v711_v32  ;;  %v2021_v32 = vld [vmem:[%s3302_s2 + $0x3] ss:$0 sm:$0xff] }
 0x2e4   :  { %v664_v22 = vmul.f32 %v2615_v21, %v537_v20 }
 0x2e6   :  { %669 = vrot.lane.b32.xlu0 %v664_v22, %s2653_s22  ;;  %666 = vrot.lane.b32.xlu1 %v664_v22, %s2654_s23 }
 0x2ea   :  { %672 = vrot.lane.b32.xlu1 %v664_v22, %s2656_s25  ;;  %713 = vrot.lane.b32.xlu0 %v2964_v3, %s2658_s27 }
 0x2ee   :  { %675 = vrot.lane.b32.xlu1 %v664_v22, %s2655_s24  ;;  %719 = vrot.lane.b32.xlu0 %v2964_v3, %s2659_s28 }
 0x2f2   :  { %678 = vrot.lane.b32.xlu1 %v664_v22, %s2658_s27 }
 0x2f6   :  { %681 = vrot.lane.b32.xlu1 %v664_v22, %s2657_s26 }
 0x2fa   :  { %684 = vrot.lane.b32.xlu1 %v664_v22, %s2659_s28 }
 0x2fe   :  { %716 = vrot.lane.b32.xlu1 %v2964_v3, %s2657_s26  ;;  %v2584_v3 = vld [vmem:[%s3301_s1 + $0x90] sm:$0xff]  }
 0x358   :  { %v667_v29 = vpop.permute.xlu1 %666  ;;  %v670_v37 = vpop.permute.xlu0 %669 }
 0x359   :  { %v687_v36 = vsel %vm601_vm4, %v664_v22, %v667_v29  ;;  %v2593_v22 = vld [vmem:[%s3301_s1 + $0xf8] sm:$0xff]  }
 0x35a   :  { %v688_v39 = vsel %vm603_vm5, %v687_v36, %v670_v37 }
 0x35c   :  { %v673_v31 = vpop.permute.xlu1 %672  ;;  %v714_v44 = vpop.permute.xlu0 %713 }
 0x35d   :  { %v689_v41 = vsel %vm605_vm6, %v688_v39, %v673_v31  ;;  %v726_v55 = vsel %vm609_vm8, %v725_v49, %v714_v44 }
 0x360   :  { %v676_v33 = vpop.permute.xlu1 %675  ;;  %v720_v52 = vpop.permute.xlu0 %719 }
 0x361   :  { %v690_v43 = vsel %vm607_vm7, %v689_v41, %v676_v33 }
 0x364   :  { %v679_v35 = vpop.permute.xlu1 %678 }
 0x365   :  { %v691_v45 = vsel %vm609_vm8, %v690_v43, %v679_v35 }
 0x368   :  { %v682_v40 = vpop.permute.xlu1 %681 }
 0x369   :  { %v692_v46 = vsel %vm611_vm9, %v691_v45, %v682_v40 }
 0x36c   :  { %v685_v47 = vpop.permute.xlu1 %684 }
 0x36d   :  { %v693_v50 = vsel %vm613_vm10, %v692_v46, %v685_v47 }
 0x36e   :  { %v697_v51 = vrot.slane %v693_v50, %v2937_v48 }
 0x370   :  { %v717_v56 = vpop.permute.xlu1 %716  ;;  %v698_v59 = vmul.f32 %v697_v51, %v2943_v53  ;;  %v699_v60 = vmul.f32 %v697_v51, %v2946_v54  ;;  %v2585_v54 = vld [vmem:[%s3301_s1 + $0x98] sm:$0xff]  }
 0x371   :  { %v727_v57 = vsel %vm611_vm9, %v726_v55, %v717_v56 }
 0x372   :  { %v728_v58 = vsel %vm613_vm10, %v727_v57, %v720_v52 }
 0x373   :  { %v732_v61 = vrot.slane %v728_v58, %v2937_v48 }
 0x375   :  { %v733_v62 = vadd.f32 %v732_v61, %v698_v59  ;;  %v734_v63 = vadd.f32 %v732_v61, %v699_v60 }
 0x377   :  { %v735_v0 = vmax.f32 %v733_v62, 0.0  ;;  %v736_v2 = vmax.f32 %v734_v63, 0.0 }
 0x379   :  { %741 = vst.msk [vmem:[#allocation2 + $0x1] sm:$0xff] %vm539_vm3, %v735_v0  ;;  %742 = vst.msk [vmem:[#allocation2 + $0xb] sm:$0xff] %vm539_vm3, %v736_v2 }
 0x380   :  { %v778_v4 = vld [vmem:[#allocation2 + $0x1] ss:$2 sm:$0xf]  ;;  %v1060_v5 = vld [vmem:[#allocation2 + $0xb] ss:$2 sm:$0xf] }
 0x381   :  { %v779_v6 = vpack.c.bf16 %v778_v4, %v778_v4  ;;  %v1061_v53 = vpack.c.bf16 %v1060_v5, %v1060_v5  ;;  %v775_v9 = vld [vmem:[#allocation2] ss:$2 sm:$0xf]  ;;  %v1057_v10 = vld [vmem:[#allocation2 + $0xa] ss:$2 sm:$0xf] }
 0x382   :  { %v776_v12 = vpack.c.bf16 %v775_v9, %v775_v9  ;;  %v1058_v13 = vpack.c.bf16 %v1057_v10, %v1057_v10  ;;  %v915_v17 = vld [vmem:[#allocation2 + $0x2] ss:$2 sm:$0xf]  ;;  %v1149_v18 = vld [vmem:[#allocation2 + $0xc] ss:$2 sm:$0xf] }
 0x383   :  { %2304 = vmatmul.mubr.msk.bf16.vlgmr.msra.gmra.mrb[16].mxu0 %vm539_vm3, %v779_v6  ;;  %2352 = vmatmul.mubr.msk.bf16.vlgmr.msra.gmra.mrb[16].mxu1 %vm539_vm3, %v1061_v53  ;;  %v916_v20 = vpack.c.bf16 %v915_v17, %v915_v17  ;;  %v1150_v21 = vpack.c.bf16 %v1149_v18, %v1149_v18  ;;  %v986_v25 = vld [vmem:[#allocation2 + $0x3] ss:$2 sm:$0xf]  ;;  %v1196_v26 = vld [vmem:[#allocation2 + $0xd] ss:$2 sm:$0xf] }
 0x384   :  { %2308 = vmatpush3.bf16.msra.mxu0 %v2584_v3  ;;  %2356 = vmatpush3.bf16.msra.mxu1 %v2584_v3  ;;  %v987_v27 = vpack.c.bf16 %v986_v25, %v986_v25  ;;  %v1197_v28 = vpack.c.bf16 %v1196_v26, %v1196_v26  ;;  %v1253_v9 = vld [vmem:[%s3302_s2 + $0x5] sm:$0x1]  ;;  %v2596_v18 = vld [vmem:[%s3301_s1 + $0x130] sm:$0xff]  }
 0x385   :  { %2309 = vmatprep.subr.bf16.mxu0 %v2644_v1  ;;  %2357 = vmatprep.subr.bf16.mxu1 %v2644_v1 }
 0x386   :  { %2315 = vmatprep.mubr.msk.bf16.mxu0 %vm2645_vm0, %v2644_v1  ;;  %2363 = vmatprep.mubr.msk.bf16.mxu1 %vm2645_vm0, %v2644_v1 }
 0x388   :  { %2310 = vmatpush3.bf16.msra.mxu0 %v2585_v54  ;;  %2358 = vmatpush3.bf16.msra.mxu1 %v2585_v54 }
 0x389   :  { %2311 = vmatprep.subr.bf16.mxu0 %v2644_v1  ;;  %2359 = vmatprep.subr.bf16.mxu1 %v2644_v1 }
 0x38c   :  { %2312 = vmatpush3.bf16.msra.mxu0 %v2586_v7  ;;  %2360 = vmatpush3.bf16.msra.mxu1 %v2586_v7 }
 0x38d   :  { %2313 = vmatprep.subr.bf16.mxu0 %v2644_v1  ;;  %2361 = vmatprep.subr.bf16.mxu1 %v2644_v1 }
 0x390   :  { %2314 = vmatpush3.bf16.msra.mxu0 %v2587_v8  ;;  %2362 = vmatpush3.bf16.msra.mxu1 %v2587_v8 }
 0x391   :  { %2319 = vmatprep.subr.bf16.mxu0 %v2644_v1  ;;  %2367 = vmatprep.subr.bf16.mxu1 %v2644_v1 }
 0x393   :  { %2316 = vmatmul.mubr.msk.bf16.vlgmr.msra.gmra.mrb[16].mxu0 %vm539_vm3, %v776_v12  ;;  %2364 = vmatmul.mubr.msk.bf16.vlgmr.msra.gmra.mrb[16].mxu1 %vm539_vm3, %v1058_v13 }
 0x394   :  { %2320 = vmatpush3.bf16.msra.mxu0 %v2588_v11  ;;  %2368 = vmatpush3.bf16.msra.mxu1 %v2588_v11 }
 0x395   :  { %2321 = vmatprep.subr.bf16.mxu0 %v2644_v1  ;;  %2369 = vmatprep.subr.bf16.mxu1 %v2644_v1 }
 0x396   :  { %2327 = vmatprep.mubr.msk.bf16.mxu0 %vm2645_vm0, %v2644_v1  ;;  %2375 = vmatprep.mubr.msk.bf16.mxu1 %vm2645_vm0, %v2644_v1 }
 0x398   :  { %2322 = vmatpush3.bf16.msra.mxu0 %v2589_v14  ;;  %2370 = vmatpush3.bf16.msra.mxu1 %v2589_v14 }
 0x399   :  { %2323 = vmatprep.subr.bf16.mxu0 %v2644_v1  ;;  %2371 = vmatprep.subr.bf16.mxu1 %v2644_v1 }
 0x39c   :  { %2324 = vmatpush3.bf16.msra.mxu0 %v2590_v15  ;;  %2372 = vmatpush3.bf16.msra.mxu1 %v2590_v15 }
 0x39d   :  { %2325 = vmatprep.subr.bf16.mxu0 %v2644_v1  ;;  %2373 = vmatprep.subr.bf16.mxu1 %v2644_v1 }
 0x3a0   :  { %2326 = vmatpush3.bf16.msra.mxu0 %v2591_v16  ;;  %2374 = vmatpush3.bf16.msra.mxu1 %v2591_v16 }
 0x3a1   :  { %2331 = vmatprep.subr.bf16.mxu0 %v2644_v1  ;;  %2379 = vmatprep.subr.bf16.mxu1 %v2644_v1 }
 0x3a3   :  { %2328 = vmatmul.mubr.msk.bf16.vlgmr.msra.gmra.mrb[16].mxu0 %vm539_vm3, %v916_v20  ;;  %2376 = vmatmul.mubr.msk.bf16.vlgmr.msra.gmra.mrb[16].mxu1 %vm539_vm3, %v1150_v21  ;;  %v2597_v20 = vld [vmem:[%s3301_s1 + $0x138] sm:$0xff]  }
 0x3a4   :  { %2332 = vmatpush3.bf16.msra.mxu0 %v2592_v19  ;;  %2380 = vmatpush3.bf16.msra.mxu1 %v2592_v19  ;;  %v1252_v19 = vld [vmem:[%s3302_s2 + $0x4] sm:$0x1] }
 0x3a5   :  { %2333 = vmatprep.subr.bf16.mxu0 %v2644_v1  ;;  %2381 = vmatprep.subr.bf16.mxu1 %v2644_v1 }
 0x3a6   :  { %2339 = vmatprep.mubr.msk.bf16.mxu0 %vm2645_vm0, %v2644_v1  ;;  %2387 = vmatprep.mubr.msk.bf16.mxu1 %vm2645_vm0, %v2644_v1 }
 0x3a8   :  { %2334 = vmatpush3.bf16.msra.mxu0 %v2593_v22  ;;  %2382 = vmatpush3.bf16.msra.mxu1 %v2593_v22 }
 0x3a9   :  { %2335 = vmatprep.subr.bf16.mxu0 %v2644_v1  ;;  %2383 = vmatprep.subr.bf16.mxu1 %v2644_v1 }
 0x3ac   :  { %2336 = vmatpush3.bf16.msra.mxu0 %v2594_v23  ;;  %2384 = vmatpush3.bf16.msra.mxu1 %v2594_v23  ;;  %v2598_v23 = vld [vmem:[%s3301_s1 + $0x140] sm:$0xff]  }
 0x3ad   :  { %2337 = vmatprep.subr.bf16.mxu0 %v2644_v1  ;;  %2385 = vmatprep.subr.bf16.mxu1 %v2644_v1 }
 0x3b0   :  { %2338 = vmatpush3.bf16.msra.mxu0 %v2595_v24  ;;  %2386 = vmatpush3.bf16.msra.mxu1 %v2595_v24  ;;  %v2599_v24 = vld [vmem:[%s3301_s1 + $0x148] sm:$0xff]  }
 0x3b1   :  { %2391 = vmatprep.subr.bf16.mxu0 %v2644_v1  ;;  %2439 = vmatprep.subr.bf16.mxu1 %v2644_v1 }
 0x3b3   :  { %2340 = vmatmul.mubr.msk.bf16.vlgmr.msra.gmra.mrb[16].mxu0 %vm539_vm3, %v987_v27  ;;  %2388 = vmatmul.mubr.msk.bf16.vlgmr.msra.gmra.mrb[16].mxu1 %vm539_vm3, %v1197_v28 }
 0x3b4   :  { %2399 = vmatprep.mubr.msk.bf16.mxu0 %vm2645_vm0, %v2644_v1  ;;  %2447 = vmatprep.mubr.msk.bf16.mxu1 %vm2645_vm0, %v2644_v1 }
 0x3b5   :  { %2392 = vmatpush3.bf16.msra.mxu0 %v2596_v18  ;;  %2440 = vmatpush3.bf16.msra.mxu1 %v2596_v18 }
 0x3b6   :  { %2393 = vmatprep.subr.bf16.mxu0 %v2644_v1  ;;  %2441 = vmatprep.subr.bf16.mxu1 %v2644_v1 }
 0x3b9   :  { %2394 = vmatpush3.bf16.msra.mxu0 %v2597_v20  ;;  %2442 = vmatpush3.bf16.msra.mxu1 %v2597_v20 }
 0x3ba   :  { %2395 = vmatprep.subr.bf16.mxu0 %v2644_v1  ;;  %2443 = vmatprep.subr.bf16.mxu1 %v2644_v1 }
 0x3bd   :  { %2396 = vmatpush3.bf16.msra.mxu0 %v2598_v23  ;;  %2444 = vmatpush3.bf16.msra.mxu1 %v2598_v23 }
 0x3be   :  { %2397 = vmatprep.subr.bf16.mxu0 %v2644_v1  ;;  %2445 = vmatprep.subr.bf16.mxu1 %v2644_v1 }
 0x3c1   :  { %2398 = vmatpush3.bf16.msra.mxu0 %v2599_v24  ;;  %2446 = vmatpush3.bf16.msra.mxu1 %v2599_v24 }
 0x3c2   :  { %2403 = vmatprep.subr.bf16.mxu0 %v2644_v1  ;;  %2451 = vmatprep.subr.bf16.mxu1 %v2644_v1 }
 0x486   :  { %v1049_v29 = vpop.f32.mrb[16].mxu0  ;;  %v1235_v30 = vpop.f32.mrb[16].mxu1 }
 0x487   :  { %v1243_v31 = vrot.slane %v1235_v30, 4  ;;  %v2341_v33 = vpop.f32.mrb[17].mxu0  ;;  %v2389_v34 = vpop.f32.mrb[17].mxu1 }
 0x488   :  { %v1052_v35 = vpop.f32.mrb[18].mxu0  ;;  %v1238_v36 = vpop.f32.mrb[18].mxu1 }
 0x489   :  { %v1245_v37 = vsel %vm85_vm1, %v1049_v29, %v1243_v31  ;;  %v2342_v38 = vpop.f32.mrb[19].mxu0  ;;  %v2390_v39 = vpop.f32.mrb[19].mxu1 }
 0x48a   :  { %v1251_v40 = vadd.f32 %v2021_v32, %v1245_v37 }
 0x48c   :  { %v1254_v41 = vsel %vm539_vm3, %v1251_v40, 0.0 }
 0x48d   :  { %v1255_v42 = vrot.slane %v1254_v41, 4 }
 0x48f   :  { %v1256_v43 = vadd.f32 %v1255_v42, %v1254_v41 }
 0x491   :  { %v1257_v44 = vrot.slane %v1256_v43, 2 }
 0x493   :  { %v1258_v45 = vadd.f32 %v1257_v44, %v1256_v43  ;;  %v2600_v43 = vld [vmem:[%s3301_s1 + $0x110] sm:$0xff]  }
 0x495   :  { %v1259_v46 = vrot.slane %v1258_v45, 1 }
 0x497   :  { %v1260_v47 = vadd.f32 %v1259_v46, %v1258_v45  ;;  %v2601_v46 = vld [vmem:[%s3301_s1 + $0x118] sm:$0xff]  }
 0x499   :  { %1266 = vrot.lane.b32.xlu0 %v1260_v47, %s2648_s17  ;;  %1262 = vrot.lane.b32.xlu1 %v1260_v47, %s2649_s18 }
 0x49d   :  { %1270 = vrot.lane.b32.xlu1 %v1260_v47, %s2650_s19 }
 0x50b   :  { %v1263_v49 = vpop.permute.xlu1 %1262  ;;  %v1267_v51 = vpop.permute.xlu0 %1266 }
 0x50c   :  { %v1265_v50 = vadd.f32 %v1263_v49, %v1260_v47  ;;  %v2602_v47 = vld [vmem:[%s3301_s1 + $0x120] sm:$0xff]   ;;  %v2603_v49 = vld [vmem:[%s3301_s1 + $0x128] sm:$0xff]  }
 0x50e   :  { %v1269_v52 = vadd.f32 %v1267_v51, %v1265_v50  ;;  %v2604_v50 = vld [vmem:[%s3301_s1 + $0x150] sm:$0xff]  }
 0x50f   :  { %v1271_v55 = vpop.permute.xlu1 %1270 }
 0x510   :  { %v1273_v56 = vadd.f32 %v1271_v55, %v1269_v52  ;;  %v2605_v52 = vld [vmem:[%s3301_s1 + $0x158] sm:$0xff]   ;;  %v2606_v55 = vld [vmem:[%s3301_s1 + $0x160] sm:$0xff]  }
 0x512   :  { %v1274_v57 = vmul.f32 0.03125, %v1273_v56  ;;  %v2607_v56 = vld [vmem:[%s3301_s1 + $0x168] sm:$0xff]  }
 0x514   :  { %1279 = vrot.lane.b32.xlu1 %v1274_v57, %s2655_s24  ;;  %1276 = vrot.lane.b32.xlu0 %v1274_v57, %s2653_s22 }
 0x518   :  { %1282 = vrot.lane.b32.xlu0 %v1274_v57, %s2657_s26 }
 0x586   :  { %v1277_v58 = vpop.permute.xlu0 %1276  ;;  %v1280_v59 = vpop.permute.xlu1 %1279 }
 0x587   :  { %v1285_v60 = vsel %vm603_vm5, %v1274_v57, %v1277_v58  ;;  %v2608_v57 = vld [vmem:[%s3301_s1 + $0x170] sm:$0xff]  }
 0x588   :  { %v1286_v61 = vsel %vm607_vm7, %v1285_v60, %v1280_v59  ;;  %v2609_v60 = vld [vmem:[%s3301_s1 + $0x178] sm:$0xff]  }
 0x58a   :  { %v1283_v62 = vpop.permute.xlu0 %1282 }
 0x58b   :  { %v1287_v63 = vsel %vm611_vm9, %v1286_v61, %v1283_v62  ;;  %v2610_v61 = vld [vmem:[%s3301_s1 + $0x180] sm:$0xff]   ;;  %v2611_v62 = vld [vmem:[%s3301_s1 + $0x188] sm:$0xff]  }
 0x58c   :  { %v1291_v0 = vrot.slane %v1287_v63, %v2937_v48 }
 0x58e   :  { %v3131_v2 = vsub.f32 %v1251_v40, %v1291_v0 }
 0x590   :  { %v1293_v3 = vmul.f32 %v3131_v2, %v3131_v2 }
 0x592   :  { %v1294_v4 = vsel %vm539_vm3, %v1293_v3, 0.0  ;;  %v2613_v3 = vld [vmem:[%s3301_s1 + $0x198] sm:$0xff]  }
 0x593   :  { %v1295_v5 = vrot.slane %v1294_v4, 4 }
 0x595   :  { %v1296_v6 = vadd.f32 %v1295_v5, %v1294_v4 }
 0x597   :  { %v1297_v53 = vrot.slane %v1296_v6, 2 }
 0x599   :  { %v1298_v54 = vadd.f32 %v1297_v53, %v1296_v6 }
 0x59b   :  { %v1299_v7 = vrot.slane %v1298_v54, 1 }
 0x59d   :  { %v1300_v8 = vadd.f32 %v1299_v7, %v1298_v54  ;;  %v2046_v7 = vld [vmem:[%s3302_s2 + $0x6] ss:$0 sm:$0xff] }
 0x59f   :  { %1306 = vrot.lane.b32.xlu0 %v1300_v8, %s2648_s17  ;;  %1302 = vrot.lane.b32.xlu1 %v1300_v8, %s2649_s18 }
 0x5a3   :  { %1310 = vrot.lane.b32.xlu1 %v1300_v8, %s2650_s19 }
 0x5a7   :  { %1337 = vrot.lane.b32.xlu1 %v1253_v9, %s2653_s22 }
 0x611   :  { %v1303_v10 = vpop.permute.xlu1 %1302  ;;  %v1307_v12 = vpop.permute.xlu0 %1306 }
 0x612   :  { %v1305_v11 = vadd.f32 %v1303_v10, %v1300_v8 }
 0x614   :  { %v1309_v13 = vadd.f32 %v1307_v12, %v1305_v11 }
 0x615   :  { %v1311_v14 = vpop.permute.xlu1 %1310 }
 0x616   :  { %v1313_v15 = vadd.f32 %v1311_v14, %v1309_v13 }
 0x618   :  { %v1314_v16 = vmul.f32 0.03125, %v1313_v15 }
 0x619   :  { %v1338_v25 = vpop.permute.xlu1 %1337 }
 0x61a   :  { %v1315_v17 = vadd.f32 1e-05, %v1314_v16  ;;  %v1346_v34 = vsel %vm603_vm5, %v1253_v9, %v1338_v25 }
 0x61c   :  { %2616 = vrsqrt.f32 %v1315_v17 }
 0x626   :  { %v2617_v21 = vpop.eup %2616 }
 0x627   :  { %v1317_v22 = vmul.f32 %v2617_v21, %v1252_v19 }
 0x629   :  { %1322 = vrot.lane.b32.xlu1 %v1317_v22, %s2655_s24  ;;  %1319 = vrot.lane.b32.xlu0 %v1317_v22, %s2653_s22 }
 0x62d   :  { %1325 = vrot.lane.b32.xlu0 %v1317_v22, %s2657_s26  ;;  %1343 = vrot.lane.b32.xlu1 %v1253_v9, %s2657_s26 }
 0x631   :  { %1340 = vrot.lane.b32.xlu0 %v1253_v9, %s2655_s24 }
 0x69b   :  { %v1320_v26 = vpop.permute.xlu0 %1319  ;;  %v1323_v28 = vpop.permute.xlu1 %1322 }
 0x69c   :  { %v1328_v27 = vsel %vm603_vm5, %v1317_v22, %v1320_v26 }
 0x69d   :  { %v1329_v29 = vsel %vm607_vm7, %v1328_v27, %v1323_v28 }
 0x69f   :  { %v1326_v30 = vpop.permute.xlu0 %1325  ;;  %v1344_v33 = vpop.permute.xlu1 %1343 }
 0x6a0   :  { %v1330_v31 = vsel %vm611_vm9, %v1329_v29, %v1326_v30 }
 0x6a1   :  { %v1334_v32 = vrot.slane %v1330_v31, %v2937_v48 }
 0x6a3   :  { %v1341_v35 = vpop.permute.xlu0 %1340  ;;  %v1335_v38 = vmul.f32 %v1334_v32, %v3131_v2  ;;  %v2612_v2 = vld [vmem:[%s3301_s1 + $0x190] sm:$0xff]   ;;  %v1852_v32 = vld [vmem:[%s3302_s2 + $0x7] sm:$0x1] }
 0x6a4   :  { %v1347_v36 = vsel %vm607_vm7, %v1346_v34, %v1341_v35 }
 0x6a5   :  { %v1348_v37 = vsel %vm611_vm9, %v1347_v36, %v1344_v33  ;;  %v2047_v36 = vld [vmem:[%s3302_s2 + $0x8] ss:$0 sm:$0xff] }
 0x6a6   :  { %v1352_v39 = vrot.slane %v1348_v37, %v2937_v48 }
 0x6a8   :  { %v1353_v40 = vadd.f32 %v1352_v39, %v1335_v38 }
 0x6aa   :  { %v1354_v41 = vmax.f32 %v1353_v40, 0.0 }
 0x6ac   :  { %v1387_v42 = vpack.c.bf16 %v1354_v41, %v1354_v41  ;;  %v2048_v41 = vld [vmem:[%s3302_s2 + $0x9] ss:$0 sm:$0xff] }
 0x6ae   :  { %v3183_v44 = vshrl.u32 %v1387_v42, 16  ;;  %v1707_v51 = vrot.slane %v1387_v42, 2  ;;  %v1525_v58 = vrot.slane %v1387_v42, 1  ;;  %v1751_v59 = vrot.slane %v1387_v42, 3 }
 0x6b0   :  { %2400 = vmatmul.mubr.msk.bf16.vlgmr.msra.gmra.mrb[20].mxu0 %vm539_vm3, %v3183_v44  ;;  %v1663_v45 = vrot.slane %v3183_v44, 2  ;;  %v1594_v63 = vrot.slane %v3183_v44, 1  ;;  %v1796_v0 = vrot.slane %v3183_v44, 3 }
 0x6b1   :  { %2404 = vmatpush3.bf16.msra.mxu0 %v2600_v43  ;;  %2411 = vmatprep.mubr.msk.bf16.mxu0 %vm2645_vm0, %v2644_v1 }
 0x6b2   :  { %2448 = vmatmul.mubr.msk.bf16.vlgmr.msra.gmra.mrb[20].mxu1 %vm539_vm3, %v1663_v45  ;;  %2405 = vmatprep.subr.bf16.mxu0 %v2644_v1 }
 0x6b3   :  { %2452 = vmatpush3.bf16.msra.mxu1 %v2600_v43  ;;  %2459 = vmatprep.mubr.msk.bf16.mxu1 %vm2645_vm0, %v2644_v1 }
 0x6b4   :  { %2453 = vmatprep.subr.bf16.mxu1 %v2644_v1 }
 0x6b5   :  { %2406 = vmatpush3.bf16.msra.mxu0 %v2601_v46 }
 0x6b6   :  { %2407 = vmatprep.subr.bf16.mxu0 %v2644_v1 }
 0x6b7   :  { %2454 = vmatpush3.bf16.msra.mxu1 %v2601_v46 }
 0x6b8   :  { %2455 = vmatprep.subr.bf16.mxu1 %v2644_v1 }
 0x6b9   :  { %2408 = vmatpush3.bf16.msra.mxu0 %v2602_v47 }
 0x6ba   :  { %2409 = vmatprep.subr.bf16.mxu0 %v2644_v1 }
 0x6bb   :  { %2456 = vmatpush3.bf16.msra.mxu1 %v2602_v47 }
 0x6bc   :  { %2457 = vmatprep.subr.bf16.mxu1 %v2644_v1 }
 0x6bd   :  { %2410 = vmatpush3.bf16.msra.mxu0 %v2603_v49 }
 0x6be   :  { %2415 = vmatprep.subr.bf16.mxu0 %v2644_v1 }
 0x6bf   :  { %2458 = vmatpush3.bf16.msra.mxu1 %v2603_v49 }
 0x6c0   :  { %2412 = vmatmul.mubr.msk.bf16.vlgmr.msra.gmra.mrb[20].mxu0 %vm539_vm3, %v1387_v42  ;;  %2463 = vmatprep.subr.bf16.mxu1 %v2644_v1 }
 0x6c1   :  { %2416 = vmatpush3.bf16.msra.mxu0 %v2604_v50  ;;  %2423 = vmatprep.mubr.msk.bf16.mxu0 %vm2645_vm0, %v2644_v1 }
 0x6c2   :  { %2460 = vmatmul.mubr.msk.bf16.vlgmr.msra.gmra.mrb[20].mxu1 %vm539_vm3, %v1707_v51  ;;  %2417 = vmatprep.subr.bf16.mxu0 %v2644_v1 }
 0x6c3   :  { %2464 = vmatpush3.bf16.msra.mxu1 %v2604_v50  ;;  %2471 = vmatprep.mubr.msk.bf16.mxu1 %vm2645_vm0, %v2644_v1 }
 0x6c4   :  { %2465 = vmatprep.subr.bf16.mxu1 %v2644_v1 }
 0x6c5   :  { %2418 = vmatpush3.bf16.msra.mxu0 %v2605_v52 }
 0x6c6   :  { %2419 = vmatprep.subr.bf16.mxu0 %v2644_v1 }
 0x6c7   :  { %2466 = vmatpush3.bf16.msra.mxu1 %v2605_v52 }
 0x6c8   :  { %2467 = vmatprep.subr.bf16.mxu1 %v2644_v1 }
 0x6c9   :  { %2420 = vmatpush3.bf16.msra.mxu0 %v2606_v55 }
 0x6ca   :  { %2421 = vmatprep.subr.bf16.mxu0 %v2644_v1 }
 0x6cb   :  { %2468 = vmatpush3.bf16.msra.mxu1 %v2606_v55 }
 0x6cc   :  { %2469 = vmatprep.subr.bf16.mxu1 %v2644_v1 }
 0x6cd   :  { %2422 = vmatpush3.bf16.msra.mxu0 %v2607_v56 }
 0x6ce   :  { %2427 = vmatprep.subr.bf16.mxu0 %v2644_v1 }
 0x6cf   :  { %2470 = vmatpush3.bf16.msra.mxu1 %v2607_v56 }
 0x6d0   :  { %2424 = vmatmul.mubr.msk.bf16.vlgmr.msra.gmra.mrb[20].mxu0 %vm539_vm3, %v1525_v58  ;;  %2475 = vmatprep.subr.bf16.mxu1 %v2644_v1 }
 0x6d1   :  { %2428 = vmatpush3.bf16.msra.mxu0 %v2608_v57  ;;  %2435 = vmatprep.mubr.msk.bf16.mxu0 %vm2645_vm0, %v2644_v1 }
 0x6d2   :  { %2472 = vmatmul.mubr.msk.bf16.vlgmr.msra.gmra.mrb[20].mxu1 %vm539_vm3, %v1751_v59  ;;  %2429 = vmatprep.subr.bf16.mxu0 %v2644_v1 }
 0x6d3   :  { %2476 = vmatpush3.bf16.msra.mxu1 %v2608_v57  ;;  %2483 = vmatprep.mubr.msk.bf16.mxu1 %vm2645_vm0, %v2644_v1 }
 0x6d4   :  { %2477 = vmatprep.subr.bf16.mxu1 %v2644_v1 }
 0x6d5   :  { %2430 = vmatpush3.bf16.msra.mxu0 %v2609_v60 }
 0x6d6   :  { %2431 = vmatprep.subr.bf16.mxu0 %v2644_v1 }
 0x6d7   :  { %2478 = vmatpush3.bf16.msra.mxu1 %v2609_v60 }
 0x6d8   :  { %2479 = vmatprep.subr.bf16.mxu1 %v2644_v1 }
 0x6d9   :  { %2432 = vmatpush3.bf16.msra.mxu0 %v2610_v61 }
 0x6da   :  { %2433 = vmatprep.subr.bf16.mxu0 %v2644_v1 }
 0x6db   :  { %2480 = vmatpush3.bf16.msra.mxu1 %v2610_v61 }
 0x6dc   :  { %2481 = vmatprep.subr.bf16.mxu1 %v2644_v1 }
 0x6dd   :  { %2434 = vmatpush3.bf16.msra.mxu0 %v2611_v62 }
 0x6de   :  { %2487 = vmatprep.subr.bf16.mxu0 %v2644_v1 }
 0x6df   :  { %2482 = vmatpush3.bf16.msra.mxu1 %v2611_v62 }
 0x6e0   :  { %2436 = vmatmul.mubr.msk.bf16.vlgmr.msra.gmra.mrb[20].mxu0 %vm539_vm3, %v1594_v63 }
 0x6e1   :  { %2491 = vmatprep.mubr.msk.bf16.mxu0 %vm2645_vm0, %v2644_v1  ;;  %2488 = vmatpush3.bf16.msra.mxu0 %v2612_v2 }
 0x6e2   :  { %2484 = vmatmul.mubr.msk.bf16.vlgmr.msra.gmra.mrb[20].mxu1 %vm539_vm3, %v1796_v0  ;;  %2489 = vmatprep.subr.bf16.mxu0 %v2644_v1 }
 0x6e5   :  { %2490 = vmatpush3.bf16.msra.mxu0 %v2613_v3 }
 0x7b3   :  { %v1656_v4 = vpop.f32.mrb[20].mxu0 }
 0x7b4   :  { %v2437_v5 = vpop.f32.mrb[21].mxu0 }
 0x7b5   :  { %v1659_v6 = vpop.f32.mrb[22].mxu0  ;;  %v1834_v53 = vpop.f32.mrb[20].mxu1 }
 0x7b6   :  { %v1842_v54 = vrot.slane %v1834_v53, 7  ;;  %v2438_v8 = vpop.f32.mrb[23].mxu0  ;;  %v2485_v9 = vpop.f32.mrb[21].mxu1 }
 0x7b7   :  { %v1837_v10 = vpop.f32.mrb[22].mxu1 }
 0x7b8   :  { %v1845_v11 = vsel %vm1844_vm12, %v1656_v4, %v1842_v54  ;;  %v2486_v12 = vpop.f32.mrb[23].mxu1 }
 0x7b9   :  { %v1851_v13 = vadd.f32 %v2046_v7, %v1845_v11 }
 0x7bb   :  { %v1855_v14 = vsel %vm1854_vm13, %v1851_v13, 0.0 }
 0x7bc   :  { %v1856_v1 = vrot.slane %v1855_v14, 4 }
 0x7be   :  { %v1857_v15 = vadd.f32 %v1856_v1, %v1855_v14 }
 0x7c0   :  { %v1858_v16 = vrot.slane %v1857_v15, 2 }
 0x7c2   :  { %v1859_v17 = vadd.f32 %v1858_v16, %v1857_v15 }
 0x7c4   :  { %v1860_v18 = vrot.slane %v1859_v17, 1 }
 0x7c6   :  { %v1861_v19 = vadd.f32 %v1860_v18, %v1859_v17 }
 0x7c8   :  { %v1862_v20 = vmul.f32 0.5, %v1861_v19 }
 0x7ca   :  { %v1863_v21 = vsub.f32 %v1851_v13, %v1862_v20 }
 0x7cc   :  { %v1864_v22 = vmul.f32 %v1863_v21, %v1863_v21 }
 0x7ce   :  { %v1865_v23 = vsel %vm1854_vm13, %v1864_v22, 0.0 }
 0x7cf   :  { %v1866_v24 = vrot.slane %v1865_v23, 4 }
 0x7d1   :  { %v1867_v25 = vadd.f32 %v1866_v24, %v1865_v23 }
 0x7d3   :  { %v1868_v26 = vrot.slane %v1867_v25, 2 }
 0x7d5   :  { %v1869_v27 = vadd.f32 %v1868_v26, %v1867_v25 }
 0x7d7   :  { %v1870_v28 = vrot.slane %v1869_v27, 1 }
 0x7d9   :  { %v1871_v29 = vadd.f32 %v1870_v28, %v1869_v27 }
 0x7db   :  { %v1872_v30 = vmul.f32 0.5, %v1871_v29 }
 0x7dd   :  { %v1873_v31 = vadd.f32 1e-05, %v1872_v30 }
 0x7df   :  { %2618 = vrsqrt.f32 %v1873_v31 }
 0x7e9   :  { %v2619_v33 = vpop.eup %2618 }
 0x7ea   :  { %v1875_v34 = vmul.f32 %v2619_v33, %v1852_v32 }
 0x7ec   :  { %v1879_v35 = vrot.slane %v1875_v34, %v2937_v48 }
 0x7ee   :  { %v1880_v37 = vmul.f32 %v1879_v35, %v1863_v21 }
 0x7f0   :  { %v1885_v38 = vadd.f32 %v2047_v36, %v1880_v37 }
 0x7f2   :  { %v1886_v39 = vmax.f32 %v1885_v38, 0.0 }
 0x7f4   :  { %v1891_v40 = vpack.c.bf16 %v1886_v39, %v1886_v39 }
 0x7f6   :  { %2492 = vmatmul.mubr.msk.bf16.vlgmr.msra.gmra.mrb[24].mxu0 %vm607_vm7, %v1891_v40 }
 0x8c9   :  { %v1946_v42 = vpop.f32.mrb[24].mxu0 }
 0x8ca   :  { %v1947_v43 = vadd.f32 %v2048_v41, %v1946_v42  ;;  %v2493_v48 = vpop.f32.mrb[25].mxu0 }
 0x8cb   :  { %v1949_v44 = vpop.f32.mrb[26].mxu0 }
 0x8cc   :  { %v2494_v45 = vpop.f32.mrb[27].mxu0  ;;  %1953 = vst.msk [vmem:[#allocation3] sm:$0x3] %vm1952_vm14, %v1947_v43 }
 0x8cd   :  { %2631 = shalt.err (!%p2628_p4)
}
 0x8ce   :  { %s2632_s2 = scalar_lea.hbm %s3303_s3, 32 }
 0x8cf   :  { %p2633_p5 = scmp.ne.s32.totalorder %s3303_s3, %s2632_s2  ;;  %p2636_p6 = scmp.lt.u32.totalorder %s2632_s2, %s3303_s3 }
 0x8d1   :  { %p2638_p7 = pnand %p2636_p6, %p2633_p5 }
 0x8d3   :  { %2641 = shalt.err (!%p2638_p7)
}
 0x8d4   :  { %1963 = dma.vmem_to_hbm [thread:$0]  %s1961_s10, 32, %s3303_s3, [#allocation4]  }
 0x8d5   :  { %2642 = dma.done.wait [#allocation4], 32  }
 0x8d6   :  { %2643 = vsyncadd [#allocation4], 4294967264 }
 0x8d7   :  { %1967 = vsyncpa [#allocation4], 1 }

</bundles_post_ra>
